<compile_context>
chip_gen: v5e
topology: v5e:2x2
jax: 0.10.0
libtpu: 0.0.40
codegen_flags: <defaults>
</compile_context>

<pallas_src>
import jax
import jax.numpy as jnp
import numpy as np
from jax.experimental import pallas as pl
from jax.experimental.pallas import tpu as pltpu

HIDDEN_NF = 32          # hidden_nf
EDGE_FEAT_NF = 2        # edge_feat_nf (distance + 1 raw edge attribute)
NORM_FACTOR = 100.0     # normalization_factor


def _silu(z):
    return z * jax.nn.sigmoid(z)


def _eqblock_kernel(h_ref, x_ref, grow_ref, gcol_ref, nmask_ref, emask_ref,
                    eattr_ref, whh_ref, we_ref, wv_ref, bh_ref, batt_ref,
                    h_out_ref, x_out_ref):
    f32 = jnp.float32
    h = h_ref[...]                        # [N, H] f32
    x = x_ref[...]                        # [N, 3] f32
    # bf16 one-hots (exact 0/1); cast once to f32 so gathers of f32 features
    # are exact on the MXU.
    Grow = grow_ref[...].astype(f32)      # [E, N]
    Gcol = gcol_ref[...].astype(f32)      # [E, N]
    nmask = nmask_ref[...]                # [N, 1]
    emask = emask_ref[...]                # [E, 1]  == edge_mask / NORM_FACTOR
    eattr0 = eattr_ref[...]               # [E, 1]  raw edge attribute

    def mm(a, b):
        return jnp.dot(a, b, preferred_element_type=f32)

    def scatter_add(edge_vals):
        # Grow^T @ edge_vals without materializing the transpose: contract
        # the edge axis of both operands (MXU handles the transposed operand).
        return jax.lax.dot_general(
            Grow, edge_vals, (((0,), (0,)), ((), ())),
            preferred_element_type=f32)

    # ---- coord2diff ----
    x_row = mm(Grow, x)
    x_col = mm(Gcol, x)
    cd = x_row - x_col
    radial = jnp.sum(cd * cd, axis=1, keepdims=True)      # [E, 1]
    cd = cd * jax.lax.rsqrt(radial + 1e-8)                # EUP rsqrt

    def edge_bias(k, brow):
        # edge_attr @ W_edge + bias, with edge_attr = [radial, eattr0], done
        # as broadcast multiplies (no lane concat, no skinny matmul).
        we = we_ref[k]                                    # [2, H]
        return radial * we[0:1] + eattr0 * we[1:2] + bh_ref[brow:brow + 1]

    def gcl(h_in, wbase, bbase, k):
        W1r = whh_ref[wbase + 0]
        W1c = whh_ref[wbase + 1]
        W2 = whh_ref[wbase + 2]
        W3h = whh_ref[wbase + 3]
        W3a = whh_ref[wbase + 4]
        W4 = whh_ref[wbase + 5]
        h_row = mm(Grow, h_in)
        h_col = mm(Gcol, h_in)
        m = _silu(mm(h_row, W1r) + mm(h_col, W1c) + edge_bias(k, bbase + 0))
        mij = _silu(mm(m, W2) + bh_ref[bbase + 1:bbase + 2])
        att = jax.nn.sigmoid(
            jnp.sum(mij * wv_ref[k:k + 1], axis=1, keepdims=True)
            + batt_ref[k])
        ef = mij * att * emask            # emask already carries 1/NORM_FACTOR
        agg = scatter_add(ef)
        o = _silu(mm(h_in, W3h) + mm(agg, W3a) + bh_ref[bbase + 2:bbase + 3])
        o = mm(o, W4) + bh_ref[bbase + 3:bbase + 4]
        return (h_in + o) * nmask

    h1 = gcl(h, 0, 0, 0)
    h2 = gcl(h1, 6, 4, 1)

    # ---- EquivariantUpdate (coord model) ----
    Wc1r = whh_ref[12]
    Wc1c = whh_ref[13]
    Wc2 = whh_ref[14]
    h_row = mm(Grow, h2)
    h_col = mm(Gcol, h2)
    t = _silu(mm(h_row, Wc1r) + mm(h_col, Wc1c) + edge_bias(2, 8))
    t = _silu(mm(t, Wc2) + bh_ref[9:10])
    phi = jnp.sum(t * wv_ref[2:3], axis=1, keepdims=True)   # [E, 1], no bias
    trans = cd * phi * emask
    x_out = (x + scatter_add(trans)) * nmask

    h_out_ref[...] = (h2 * nmask).astype(h_out_ref.dtype)
    x_out_ref[...] = x_out.astype(x_out_ref.dtype)


def pack_params(params, hidden_nf=HIDDEN_NF):
    """Pack the 25-array param list into 5 lane-aligned slabs."""
    H = hidden_nf
    whh, we, wv, bh, batt = [], [], [], [], []
    for k in range(2):
        W1, b1, W2, b2, Wa, ba, W3, b3, W4, b4 = params[10 * k:10 * k + 10]
        whh += [W1[:H], W1[H:2 * H], W2, W3[:H], W3[H:], W4]
        we.append(W1[2 * H:])            # [EDGE_FEAT_NF, H]
        wv.append(Wa[:, 0])              # [H]
        bh += [b1[0], b2[0], b3[0], b4[0]]
        batt.append(ba[0, 0])
    Wc1, bc1, Wc2, bc2, Wc3 = params[20:25]
    whh += [Wc1[:H], Wc1[H:2 * H], Wc2]
    we.append(Wc1[2 * H:])
    wv.append(Wc3[:, 0])
    bh += [bc1[0], bc2[0]]
    return (jnp.stack(whh),                                   # [15, H, H]
            jnp.stack(we),                                    # [3, 2, H]
            jnp.stack(wv),                                    # [3, H]
            jnp.stack(bh),                                    # [10, H]
            jnp.stack(batt).astype(jnp.float32))              # [2]


def equivariant_block(h, x, edge_index, node_mask, edge_mask, edge_attr, params):
    N, H = h.shape
    row, col = edge_index[0], edge_index[1]
    # bf16 one-hot gather matrices: 0/1 exact in bf16, halves the bytes of the
    # dominant [E, N] tensors. No separate scatter matrix (Srow dropped).
    Grow = jax.nn.one_hot(row, N, dtype=jnp.bfloat16)       # [E, N]
    Gcol = jax.nn.one_hot(col, N, dtype=jnp.bfloat16)       # [E, N]
    # Fold 1/NORM_FACTOR into the edge mask on the host.
    emask_scaled = (edge_mask / NORM_FACTOR).astype(jnp.float32)

    whh, we, wv, bh, batt = pack_params(params)

    inputs = [h, x, Grow, Gcol, node_mask, emask_scaled, edge_attr,
              whh, we, wv, bh, batt]
    vmem = pl.BlockSpec(memory_space=pltpu.MemorySpace.VMEM)
    smem = pl.BlockSpec(memory_space=pltpu.MemorySpace.SMEM)
    out_shapes = (jax.ShapeDtypeStruct((N, H), jnp.float32),
                  jax.ShapeDtypeStruct((N, 3), jnp.float32))
    return pl.pallas_call(
        _eqblock_kernel,
        out_shape=out_shapes,
        in_specs=[vmem] * 11 + [smem],
        out_specs=(vmem, vmem),
        compiler_params=pltpu.CompilerParams(
            vmem_limit_bytes=32 * 1024 * 1024),
    )(*inputs)


def init_params(key, hidden_nf=HIDDEN_NF, edge_feat_nf=EDGE_FEAT_NF):
    """Deterministic synthetic init matching the PyTorch module's shapes."""
    H = hidden_nf
    ein = 2 * H + edge_feat_nf
    keys = iter(jax.random.split(key, 64))

    def lin(in_d, out_d, gain=1.0):
        limit = gain * (6.0 / (in_d + out_d)) ** 0.5
        W = jax.random.uniform(next(keys), (in_d, out_d), jnp.float32, -limit, limit)
        b = jax.random.uniform(next(keys), (1, out_d), jnp.float32, -0.1, 0.1)
        return W, b

    params = []
    for _ in range(2):  # gcl_0, gcl_1
        W1, b1 = lin(ein, H)        # edge_mlp layer 0
        W2, b2 = lin(H, H)          # edge_mlp layer 2
        Wa, ba = lin(H, 1)          # att_mlp
        W3, b3 = lin(2 * H, H)      # node_mlp layer 0
        W4, b4 = lin(H, H)          # node_mlp layer 2
        params += [W1, b1, W2, b2, Wa, ba, W3, b3, W4, b4]
    Wc1, bc1 = lin(ein, H)          # coord_mlp layer 0
    Wc2, bc2 = lin(H, H)            # coord_mlp layer 2
    Wc3, _ = lin(H, 1, gain=0.001)  # final layer, xavier gain=0.001, no bias
    params += [Wc1, bc1, Wc2, bc2, Wc3]
    return params


def reference(h, x, edge_index, node_mask, edge_mask, edge_attr, params):
    """Pure-JAX replica of the PyTorch forward for validation."""
    row, col = edge_index[0], edge_index[1]
    N = h.shape[0]

    def seg_sum(data, ids):
        return jax.ops.segment_sum(data, ids, num_segments=N) / NORM_FACTOR

    cd = x[row] - x[col]
    radial = jnp.sum(cd ** 2, axis=1, keepdims=True)
    cd = cd / jnp.sqrt(radial + 1e-8)
    eattr = jnp.concatenate([radial, edge_attr], axis=1)

    def gcl(h_in, p):
        W1, b1, W2, b2, Wa, ba, W3, b3, W4, b4 = p
        inp = jnp.concatenate([h_in[row], h_in[col], eattr], axis=1)
        mij = jax.nn.silu(jax.nn.silu(inp @ W1 + b1) @ W2 + b2)
        att = jax.nn.sigmoid(mij @ Wa + ba)
        ef = mij * att * edge_mask
        agg = seg_sum(ef, row)
        o = jax.nn.silu(jnp.concatenate([h_in, agg], axis=1) @ W3 + b3) @ W4 + b4
        return (h_in + o) * node_mask

    h1 = gcl(h, params[0:10])
    h2 = gcl(h1, params[10:20])
    Wc1, bc1, Wc2, bc2, Wc3 = params[20:25]
    inp = jnp.concatenate([h2[row], h2[col], eattr], axis=1)
    t = jax.nn.silu(jax.nn.silu(inp @ Wc1 + bc1) @ Wc2 + bc2)
    phi = t @ Wc3
    trans = cd * phi * edge_mask
    x_out = (x + seg_sum(trans, row)) * node_mask
    return h2 * node_mask, x_out


if __name__ == "__main__":
    key = jax.random.PRNGKey(0)
    k_h, k_x, k_ei, k_nm, k_em, k_ea, k_p = jax.random.split(key, 7)

    N, E, H = 8, 32, HIDDEN_NF
    h = jax.random.normal(k_h, (N, H), jnp.float32)
    x = jax.random.normal(k_x, (N, 3), jnp.float32)
    edge_index = jax.random.randint(k_ei, (2, E), 0, N, dtype=jnp.int32)
    node_mask = (jax.random.uniform(k_nm, (N, 1)) > 0.2).astype(jnp.float32)
    edge_mask = (jax.random.uniform(k_em, (E, 1)) > 0.2).astype(jnp.float32)
    edge_attr = jax.random.normal(k_ea, (E, EDGE_FEAT_NF - 1), jnp.float32)

    params = init_params(k_p)

    h_out, x_out = equivariant_block(h, x, edge_index, node_mask, edge_mask,
                                     edge_attr, params)
    jax.block_until_ready((h_out, x_out))

    h_ref, x_ref = reference(h, x, edge_index, node_mask, edge_mask,
                             edge_attr, params)
    np.testing.assert_allclose(np.asarray(h_out), np.asarray(h_ref),
                               rtol=1e-4, atol=1e-4)
    np.testing.assert_allclose(np.asarray(x_out), np.asarray(x_ref),
                               rtol=1e-4, atol=1e-4)
    print("KERNEL_OK")
</pallas_src>

<mosaic_0001>
module attributes {stable_mosaic.version = 11 : i64} {
  func.func @_eqblock_kernel(%arg0: memref<8x32xf32, #tpu.memory_space<vmem>>, %arg1: memref<8x3xf32, #tpu.memory_space<vmem>>, %arg2: memref<32x8xbf16, #tpu.memory_space<vmem>>, %arg3: memref<32x8xbf16, #tpu.memory_space<vmem>>, %arg4: memref<8x1xf32, #tpu.memory_space<vmem>>, %arg5: memref<32x1xf32, #tpu.memory_space<vmem>>, %arg6: memref<32x1xf32, #tpu.memory_space<vmem>>, %arg7: memref<15x32x32xf32, #tpu.memory_space<vmem>>, %arg8: memref<3x2x32xf32, #tpu.memory_space<vmem>>, %arg9: memref<3x32xf32, #tpu.memory_space<vmem>>, %arg10: memref<10x32xf32, #tpu.memory_space<vmem>>, %arg11: memref<2xf32, #tpu.memory_space<smem>>, %arg12: memref<8x32xf32, #tpu.memory_space<vmem>>, %arg13: memref<8x3xf32, #tpu.memory_space<vmem>>) attributes {dimension_semantics = [], scalar_prefetch = 0 : i64, scratch_operands = 0 : i64, tpu.core_type = #tpu.core_type<tc>} {
    %c0 = arith.constant 0 : index
    %c0_0 = arith.constant 0 : index
    %0 = vector.load %arg0[%c0, %c0_0] : memref<8x32xf32, #tpu.memory_space<vmem>>, vector<8x32xf32>
    %c0_1 = arith.constant 0 : index
    %c0_2 = arith.constant 0 : index
    %1 = vector.load %arg1[%c0_1, %c0_2] : memref<8x3xf32, #tpu.memory_space<vmem>>, vector<8x3xf32>
    %c0_3 = arith.constant 0 : index
    %c0_4 = arith.constant 0 : index
    %2 = vector.load %arg2[%c0_3, %c0_4] : memref<32x8xbf16, #tpu.memory_space<vmem>>, vector<32x8xbf16>
    %3 = arith.extf %2 : vector<32x8xbf16> to vector<32x8xf32>
    %c0_5 = arith.constant 0 : index
    %c0_6 = arith.constant 0 : index
    %4 = vector.load %arg3[%c0_5, %c0_6] : memref<32x8xbf16, #tpu.memory_space<vmem>>, vector<32x8xbf16>
    %5 = arith.extf %4 : vector<32x8xbf16> to vector<32x8xf32>
    %c0_7 = arith.constant 0 : index
    %c0_8 = arith.constant 0 : index
    %6 = vector.load %arg4[%c0_7, %c0_8] : memref<8x1xf32, #tpu.memory_space<vmem>>, vector<8x1xf32>
    %c0_9 = arith.constant 0 : index
    %c0_10 = arith.constant 0 : index
    %7 = vector.load %arg5[%c0_9, %c0_10] : memref<32x1xf32, #tpu.memory_space<vmem>>, vector<32x1xf32>
    %c0_11 = arith.constant 0 : index
    %c0_12 = arith.constant 0 : index
    %8 = vector.load %arg6[%c0_11, %c0_12] : memref<32x1xf32, #tpu.memory_space<vmem>>, vector<32x1xf32>
    %cst = arith.constant dense<0.000000e+00> : vector<32x3xf32>
    %9 = tpu.matmul %3, %1, %cst {dimension_numbers = #tpu.dot_dimension_numbers<[1], [0], [0], [1], [0, 0, 1, 1], [], []>} : vector<32x8xf32>, vector<8x3xf32>, vector<32x3xf32> -> vector<32x3xf32>
    %cst_13 = arith.constant dense<0.000000e+00> : vector<32x3xf32>
    %10 = tpu.matmul %5, %1, %cst_13 {dimension_numbers = #tpu.dot_dimension_numbers<[1], [0], [0], [1], [0, 0, 1, 1], [], []>} : vector<32x8xf32>, vector<8x3xf32>, vector<32x3xf32> -> vector<32x3xf32>
    %11 = arith.subf %9, %10 : vector<32x3xf32>
    %12 = arith.mulf %11, %11 : vector<32x3xf32>
    %cst_14 = arith.constant dense<0.000000e+00> : vector<32xf32>
    %13 = vector.multi_reduction <add>, %12, %cst_14 [1] : vector<32x3xf32> to vector<32xf32>
    %14 = vector.shape_cast %13 : vector<32xf32> to vector<32x1xf32>
    %cst_15 = arith.constant 9.99999993E-9 : f32
    %15 = vector.broadcast %cst_15 : f32 to vector<32x1xf32>
    %16 = arith.addf %14, %15 : vector<32x1xf32>
    %17 = math.rsqrt %16 : vector<32x1xf32>
    %18 = vector.broadcast %17 : vector<32x1xf32> to vector<32x3xf32>
    %19 = arith.mulf %11, %18 : vector<32x3xf32>
    %c0_16 = arith.constant 0 : index
    %c0_17 = arith.constant 0 : index
    %c0_18 = arith.constant 0 : index
    %20 = vector.load %arg7[%c0_16, %c0_17, %c0_18] : memref<15x32x32xf32, #tpu.memory_space<vmem>>, vector<1x32x32xf32>
    %21 = vector.shape_cast %20 : vector<1x32x32xf32> to vector<32x32xf32>
    %c1 = arith.constant 1 : index
    %c0_19 = arith.constant 0 : index
    %c0_20 = arith.constant 0 : index
    %22 = vector.load %arg7[%c1, %c0_19, %c0_20] : memref<15x32x32xf32, #tpu.memory_space<vmem>>, vector<1x32x32xf32>
    %23 = vector.shape_cast %22 : vector<1x32x32xf32> to vector<32x32xf32>
    %c2 = arith.constant 2 : index
    %c0_21 = arith.constant 0 : index
    %c0_22 = arith.constant 0 : index
    %24 = vector.load %arg7[%c2, %c0_21, %c0_22] : memref<15x32x32xf32, #tpu.memory_space<vmem>>, vector<1x32x32xf32>
    %25 = vector.shape_cast %24 : vector<1x32x32xf32> to vector<32x32xf32>
    %c3 = arith.constant 3 : index
    %c0_23 = arith.constant 0 : index
    %c0_24 = arith.constant 0 : index
    %26 = vector.load %arg7[%c3, %c0_23, %c0_24] : memref<15x32x32xf32, #tpu.memory_space<vmem>>, vector<1x32x32xf32>
    %27 = vector.shape_cast %26 : vector<1x32x32xf32> to vector<32x32xf32>
    %c4 = arith.constant 4 : index
    %c0_25 = arith.constant 0 : index
    %c0_26 = arith.constant 0 : index
    %28 = vector.load %arg7[%c4, %c0_25, %c0_26] : memref<15x32x32xf32, #tpu.memory_space<vmem>>, vector<1x32x32xf32>
    %29 = vector.shape_cast %28 : vector<1x32x32xf32> to vector<32x32xf32>
    %c5 = arith.constant 5 : index
    %c0_27 = arith.constant 0 : index
    %c0_28 = arith.constant 0 : index
    %30 = vector.load %arg7[%c5, %c0_27, %c0_28] : memref<15x32x32xf32, #tpu.memory_space<vmem>>, vector<1x32x32xf32>
    %31 = vector.shape_cast %30 : vector<1x32x32xf32> to vector<32x32xf32>
    %cst_29 = arith.constant dense<0.000000e+00> : vector<32x32xf32>
    %32 = tpu.matmul %3, %0, %cst_29 {dimension_numbers = #tpu.dot_dimension_numbers<[1], [0], [0], [1], [0, 0, 1, 1], [], []>} : vector<32x8xf32>, vector<8x32xf32>, vector<32x32xf32> -> vector<32x32xf32>
    %cst_30 = arith.constant dense<0.000000e+00> : vector<32x32xf32>
    %33 = tpu.matmul %5, %0, %cst_30 {dimension_numbers = #tpu.dot_dimension_numbers<[1], [0], [0], [1], [0, 0, 1, 1], [], []>} : vector<32x8xf32>, vector<8x32xf32>, vector<32x32xf32> -> vector<32x32xf32>
    %cst_31 = arith.constant dense<0.000000e+00> : vector<32x32xf32>
    %34 = tpu.matmul %32, %21, %cst_31 {dimension_numbers = #tpu.dot_dimension_numbers<[1], [0], [0], [1], [0, 0, 1, 1], [], []>} : vector<32x32xf32>, vector<32x32xf32>, vector<32x32xf32> -> vector<32x32xf32>
    %cst_32 = arith.constant dense<0.000000e+00> : vector<32x32xf32>
    %35 = tpu.matmul %33, %23, %cst_32 {dimension_numbers = #tpu.dot_dimension_numbers<[1], [0], [0], [1], [0, 0, 1, 1], [], []>} : vector<32x32xf32>, vector<32x32xf32>, vector<32x32xf32> -> vector<32x32xf32>
    %36 = arith.addf %34, %35 : vector<32x32xf32>
    %c0_33 = arith.constant 0 : index
    %c0_34 = arith.constant 0 : index
    %c0_35 = arith.constant 0 : index
    %37 = vector.load %arg8[%c0_33, %c0_34, %c0_35] : memref<3x2x32xf32, #tpu.memory_space<vmem>>, vector<1x2x32xf32>
    %38 = vector.shape_cast %37 : vector<1x2x32xf32> to vector<2x32xf32>
    %39 = vector.extract_strided_slice %38 {offsets = [0, 0], sizes = [1, 32], strides = [1, 1]} : vector<2x32xf32> to vector<1x32xf32>
    %40 = vector.broadcast %14 : vector<32x1xf32> to vector<32x32xf32>
    %41 = vector.broadcast %39 : vector<1x32xf32> to vector<32x32xf32>
    %42 = arith.mulf %40, %41 : vector<32x32xf32>
    %43 = vector.extract_strided_slice %38 {offsets = [1, 0], sizes = [1, 32], strides = [1, 1]} : vector<2x32xf32> to vector<1x32xf32>
    %44 = vector.broadcast %8 : vector<32x1xf32> to vector<32x32xf32>
    %45 = vector.broadcast %43 : vector<1x32xf32> to vector<32x32xf32>
    %46 = arith.mulf %44, %45 : vector<32x32xf32>
    %47 = arith.addf %42, %46 : vector<32x32xf32>
    %c0_36 = arith.constant 0 : index
    %c0_37 = arith.constant 0 : index
    %48 = vector.load %arg10[%c0_36, %c0_37] : memref<10x32xf32, #tpu.memory_space<vmem>>, vector<1x32xf32>
    %49 = vector.broadcast %48 : vector<1x32xf32> to vector<32x32xf32>
    %50 = arith.addf %47, %49 : vector<32x32xf32>
    %51 = arith.addf %36, %50 : vector<32x32xf32>
    %52 = arith.negf %51 : vector<32x32xf32>
    %53 = math.exp %52 : vector<32x32xf32>
    %cst_38 = arith.constant 1.000000e+00 : f32
    %54 = vector.broadcast %cst_38 : f32 to vector<32x32xf32>
    %55 = arith.addf %54, %53 : vector<32x32xf32>
    %56 = arith.divf %54, %55 : vector<32x32xf32>
    %57 = arith.mulf %51, %56 : vector<32x32xf32>
    %cst_39 = arith.constant dense<0.000000e+00> : vector<32x32xf32>
    %58 = tpu.matmul %57, %25, %cst_39 {dimension_numbers = #tpu.dot_dimension_numbers<[1], [0], [0], [1], [0, 0, 1, 1], [], []>} : vector<32x32xf32>, vector<32x32xf32>, vector<32x32xf32> -> vector<32x32xf32>
    %c1_40 = arith.constant 1 : index
    %c0_41 = arith.constant 0 : index
    %59 = vector.load %arg10[%c1_40, %c0_41] : memref<10x32xf32, #tpu.memory_space<vmem>>, vector<1x32xf32>
    %60 = vector.broadcast %59 : vector<1x32xf32> to vector<32x32xf32>
    %61 = arith.addf %58, %60 : vector<32x32xf32>
    %62 = arith.negf %61 : vector<32x32xf32>
    %63 = math.exp %62 : vector<32x32xf32>
    %cst_42 = arith.constant 1.000000e+00 : f32
    %64 = vector.broadcast %cst_42 : f32 to vector<32x32xf32>
    %65 = arith.addf %64, %63 : vector<32x32xf32>
    %66 = arith.divf %64, %65 : vector<32x32xf32>
    %67 = arith.mulf %61, %66 : vector<32x32xf32>
    %c0_43 = arith.constant 0 : index
    %c0_44 = arith.constant 0 : index
    %68 = vector.load %arg9[%c0_43, %c0_44] : memref<3x32xf32, #tpu.memory_space<vmem>>, vector<1x32xf32>
    %69 = vector.broadcast %68 : vector<1x32xf32> to vector<32x32xf32>
    %70 = arith.mulf %67, %69 : vector<32x32xf32>
    %cst_45 = arith.constant dense<0.000000e+00> : vector<32xf32>
    %71 = vector.multi_reduction <add>, %70, %cst_45 [1] : vector<32x32xf32> to vector<32xf32>
    %72 = vector.shape_cast %71 : vector<32xf32> to vector<32x1xf32>
    %c0_46 = arith.constant 0 : index
    %73 = memref.load %arg11[%c0_46] : memref<2xf32, #tpu.memory_space<smem>>
    %74 = vector.broadcast %73 : f32 to vector<32x1xf32>
    %75 = arith.addf %72, %74 : vector<32x1xf32>
    %76 = arith.negf %75 : vector<32x1xf32>
    %77 = math.exp %76 : vector<32x1xf32>
    %cst_47 = arith.constant 1.000000e+00 : f32
    %78 = vector.broadcast %cst_47 : f32 to vector<32x1xf32>
    %79 = arith.addf %78, %77 : vector<32x1xf32>
    %80 = arith.divf %78, %79 : vector<32x1xf32>
    %81 = vector.broadcast %80 : vector<32x1xf32> to vector<32x32xf32>
    %82 = arith.mulf %67, %81 : vector<32x32xf32>
    %83 = vector.broadcast %7 : vector<32x1xf32> to vector<32x32xf32>
    %84 = arith.mulf %82, %83 : vector<32x32xf32>
    %cst_48 = arith.constant dense<0.000000e+00> : vector<8x32xf32>
    %85 = tpu.matmul %3, %84, %cst_48 {dimension_numbers = #tpu.dot_dimension_numbers<[0], [0], [1], [1], [0, 1, 1, 1], [], []>} : vector<32x8xf32>, vector<32x32xf32>, vector<8x32xf32> -> vector<8x32xf32>
    %cst_49 = arith.constant dense<0.000000e+00> : vector<8x32xf32>
    %86 = tpu.matmul %0, %27, %cst_49 {dimension_numbers = #tpu.dot_dimension_numbers<[1], [0], [0], [1], [0, 0, 1, 1], [], []>} : vector<8x32xf32>, vector<32x32xf32>, vector<8x32xf32> -> vector<8x32xf32>
    %cst_50 = arith.constant dense<0.000000e+00> : vector<8x32xf32>
    %87 = tpu.matmul %85, %29, %cst_50 {dimension_numbers = #tpu.dot_dimension_numbers<[1], [0], [0], [1], [0, 0, 1, 1], [], []>} : vector<8x32xf32>, vector<32x32xf32>, vector<8x32xf32> -> vector<8x32xf32>
    %88 = arith.addf %86, %87 : vector<8x32xf32>
    %c2_51 = arith.constant 2 : index
    %c0_52 = arith.constant 0 : index
    %89 = vector.load %arg10[%c2_51, %c0_52] : memref<10x32xf32, #tpu.memory_space<vmem>>, vector<1x32xf32>
    %90 = vector.broadcast %89 : vector<1x32xf32> to vector<8x32xf32>
    %91 = arith.addf %88, %90 : vector<8x32xf32>
    %92 = arith.negf %91 : vector<8x32xf32>
    %93 = math.exp %92 : vector<8x32xf32>
    %cst_53 = arith.constant 1.000000e+00 : f32
    %94 = vector.broadcast %cst_53 : f32 to vector<8x32xf32>
    %95 = arith.addf %94, %93 : vector<8x32xf32>
    %96 = arith.divf %94, %95 : vector<8x32xf32>
    %97 = arith.mulf %91, %96 : vector<8x32xf32>
    %cst_54 = arith.constant dense<0.000000e+00> : vector<8x32xf32>
    %98 = tpu.matmul %97, %31, %cst_54 {dimension_numbers = #tpu.dot_dimension_numbers<[1], [0], [0], [1], [0, 0, 1, 1], [], []>} : vector<8x32xf32>, vector<32x32xf32>, vector<8x32xf32> -> vector<8x32xf32>
    %c3_55 = arith.constant 3 : index
    %c0_56 = arith.constant 0 : index
    %99 = vector.load %arg10[%c3_55, %c0_56] : memref<10x32xf32, #tpu.memory_space<vmem>>, vector<1x32xf32>
    %100 = vector.broadcast %99 : vector<1x32xf32> to vector<8x32xf32>
    %101 = arith.addf %98, %100 : vector<8x32xf32>
    %102 = arith.addf %0, %101 : vector<8x32xf32>
    %103 = vector.broadcast %6 : vector<8x1xf32> to vector<8x32xf32>
    %104 = arith.mulf %102, %103 : vector<8x32xf32>
    %c6 = arith.constant 6 : index
    %c0_57 = arith.constant 0 : index
    %c0_58 = arith.constant 0 : index
    %105 = vector.load %arg7[%c6, %c0_57, %c0_58] : memref<15x32x32xf32, #tpu.memory_space<vmem>>, vector<1x32x32xf32>
    %106 = vector.shape_cast %105 : vector<1x32x32xf32> to vector<32x32xf32>
    %c7 = arith.constant 7 : index
    %c0_59 = arith.constant 0 : index
    %c0_60 = arith.constant 0 : index
    %107 = vector.load %arg7[%c7, %c0_59, %c0_60] : memref<15x32x32xf32, #tpu.memory_space<vmem>>, vector<1x32x32xf32>
    %108 = vector.shape_cast %107 : vector<1x32x32xf32> to vector<32x32xf32>
    %c8 = arith.constant 8 : index
    %c0_61 = arith.constant 0 : index
    %c0_62 = arith.constant 0 : index
    %109 = vector.load %arg7[%c8, %c0_61, %c0_62] : memref<15x32x32xf32, #tpu.memory_space<vmem>>, vector<1x32x32xf32>
    %110 = vector.shape_cast %109 : vector<1x32x32xf32> to vector<32x32xf32>
    %c9 = arith.constant 9 : index
    %c0_63 = arith.constant 0 : index
    %c0_64 = arith.constant 0 : index
    %111 = vector.load %arg7[%c9, %c0_63, %c0_64] : memref<15x32x32xf32, #tpu.memory_space<vmem>>, vector<1x32x32xf32>
    %112 = vector.shape_cast %111 : vector<1x32x32xf32> to vector<32x32xf32>
    %c10 = arith.constant 10 : index
    %c0_65 = arith.constant 0 : index
    %c0_66 = arith.constant 0 : index
    %113 = vector.load %arg7[%c10, %c0_65, %c0_66] : memref<15x32x32xf32, #tpu.memory_space<vmem>>, vector<1x32x32xf32>
    %114 = vector.shape_cast %113 : vector<1x32x32xf32> to vector<32x32xf32>
    %c11 = arith.constant 11 : index
    %c0_67 = arith.constant 0 : index
    %c0_68 = arith.constant 0 : index
    %115 = vector.load %arg7[%c11, %c0_67, %c0_68] : memref<15x32x32xf32, #tpu.memory_space<vmem>>, vector<1x32x32xf32>
    %116 = vector.shape_cast %115 : vector<1x32x32xf32> to vector<32x32xf32>
    %cst_69 = arith.constant dense<0.000000e+00> : vector<32x32xf32>
    %117 = tpu.matmul %3, %104, %cst_69 {dimension_numbers = #tpu.dot_dimension_numbers<[1], [0], [0], [1], [0, 0, 1, 1], [], []>} : vector<32x8xf32>, vector<8x32xf32>, vector<32x32xf32> -> vector<32x32xf32>
    %cst_70 = arith.constant dense<0.000000e+00> : vector<32x32xf32>
    %118 = tpu.matmul %5, %104, %cst_70 {dimension_numbers = #tpu.dot_dimension_numbers<[1], [0], [0], [1], [0, 0, 1, 1], [], []>} : vector<32x8xf32>, vector<8x32xf32>, vector<32x32xf32> -> vector<32x32xf32>
    %cst_71 = arith.constant dense<0.000000e+00> : vector<32x32xf32>
    %119 = tpu.matmul %117, %106, %cst_71 {dimension_numbers = #tpu.dot_dimension_numbers<[1], [0], [0], [1], [0, 0, 1, 1], [], []>} : vector<32x32xf32>, vector<32x32xf32>, vector<32x32xf32> -> vector<32x32xf32>
    %cst_72 = arith.constant dense<0.000000e+00> : vector<32x32xf32>
    %120 = tpu.matmul %118, %108, %cst_72 {dimension_numbers = #tpu.dot_dimension_numbers<[1], [0], [0], [1], [0, 0, 1, 1], [], []>} : vector<32x32xf32>, vector<32x32xf32>, vector<32x32xf32> -> vector<32x32xf32>
    %121 = arith.addf %119, %120 : vector<32x32xf32>
    %c1_73 = arith.constant 1 : index
    %c0_74 = arith.constant 0 : index
    %c0_75 = arith.constant 0 : index
    %122 = vector.load %arg8[%c1_73, %c0_74, %c0_75] : memref<3x2x32xf32, #tpu.memory_space<vmem>>, vector<1x2x32xf32>
    %123 = vector.shape_cast %122 : vector<1x2x32xf32> to vector<2x32xf32>
    %124 = vector.extract_strided_slice %123 {offsets = [0, 0], sizes = [1, 32], strides = [1, 1]} : vector<2x32xf32> to vector<1x32xf32>
    %125 = vector.broadcast %14 : vector<32x1xf32> to vector<32x32xf32>
    %126 = vector.broadcast %124 : vector<1x32xf32> to vector<32x32xf32>
    %127 = arith.mulf %125, %126 : vector<32x32xf32>
    %128 = vector.extract_strided_slice %123 {offsets = [1, 0], sizes = [1, 32], strides = [1, 1]} : vector<2x32xf32> to vector<1x32xf32>
    %129 = vector.broadcast %8 : vector<32x1xf32> to vector<32x32xf32>
    %130 = vector.broadcast %128 : vector<1x32xf32> to vector<32x32xf32>
    %131 = arith.mulf %129, %130 : vector<32x32xf32>
    %132 = arith.addf %127, %131 : vector<32x32xf32>
    %c4_76 = arith.constant 4 : index
    %c0_77 = arith.constant 0 : index
    %133 = vector.load %arg10[%c4_76, %c0_77] : memref<10x32xf32, #tpu.memory_space<vmem>>, vector<1x32xf32>
    %134 = vector.broadcast %133 : vector<1x32xf32> to vector<32x32xf32>
    %135 = arith.addf %132, %134 : vector<32x32xf32>
    %136 = arith.addf %121, %135 : vector<32x32xf32>
    %137 = arith.negf %136 : vector<32x32xf32>
    %138 = math.exp %137 : vector<32x32xf32>
    %cst_78 = arith.constant 1.000000e+00 : f32
    %139 = vector.broadcast %cst_78 : f32 to vector<32x32xf32>
    %140 = arith.addf %139, %138 : vector<32x32xf32>
    %141 = arith.divf %139, %140 : vector<32x32xf32>
    %142 = arith.mulf %136, %141 : vector<32x32xf32>
    %cst_79 = arith.constant dense<0.000000e+00> : vector<32x32xf32>
    %143 = tpu.matmul %142, %110, %cst_79 {dimension_numbers = #tpu.dot_dimension_numbers<[1], [0], [0], [1], [0, 0, 1, 1], [], []>} : vector<32x32xf32>, vector<32x32xf32>, vector<32x32xf32> -> vector<32x32xf32>
    %c5_80 = arith.constant 5 : index
    %c0_81 = arith.constant 0 : index
    %144 = vector.load %arg10[%c5_80, %c0_81] : memref<10x32xf32, #tpu.memory_space<vmem>>, vector<1x32xf32>
    %145 = vector.broadcast %144 : vector<1x32xf32> to vector<32x32xf32>
    %146 = arith.addf %143, %145 : vector<32x32xf32>
    %147 = arith.negf %146 : vector<32x32xf32>
    %148 = math.exp %147 : vector<32x32xf32>
    %cst_82 = arith.constant 1.000000e+00 : f32
    %149 = vector.broadcast %cst_82 : f32 to vector<32x32xf32>
    %150 = arith.addf %149, %148 : vector<32x32xf32>
    %151 = arith.divf %149, %150 : vector<32x32xf32>
    %152 = arith.mulf %146, %151 : vector<32x32xf32>
    %c1_83 = arith.constant 1 : index
    %c0_84 = arith.constant 0 : index
    %153 = vector.load %arg9[%c1_83, %c0_84] : memref<3x32xf32, #tpu.memory_space<vmem>>, vector<1x32xf32>
    %154 = vector.broadcast %153 : vector<1x32xf32> to vector<32x32xf32>
    %155 = arith.mulf %152, %154 : vector<32x32xf32>
    %cst_85 = arith.constant dense<0.000000e+00> : vector<32xf32>
    %156 = vector.multi_reduction <add>, %155, %cst_85 [1] : vector<32x32xf32> to vector<32xf32>
    %157 = vector.shape_cast %156 : vector<32xf32> to vector<32x1xf32>
    %c1_86 = arith.constant 1 : index
    %158 = memref.load %arg11[%c1_86] : memref<2xf32, #tpu.memory_space<smem>>
    %159 = vector.broadcast %158 : f32 to vector<32x1xf32>
    %160 = arith.addf %157, %159 : vector<32x1xf32>
    %161 = arith.negf %160 : vector<32x1xf32>
    %162 = math.exp %161 : vector<32x1xf32>
    %cst_87 = arith.constant 1.000000e+00 : f32
    %163 = vector.broadcast %cst_87 : f32 to vector<32x1xf32>
    %164 = arith.addf %163, %162 : vector<32x1xf32>
    %165 = arith.divf %163, %164 : vector<32x1xf32>
    %166 = vector.broadcast %165 : vector<32x1xf32> to vector<32x32xf32>
    %167 = arith.mulf %152, %166 : vector<32x32xf32>
    %168 = vector.broadcast %7 : vector<32x1xf32> to vector<32x32xf32>
    %169 = arith.mulf %167, %168 : vector<32x32xf32>
    %cst_88 = arith.constant dense<0.000000e+00> : vector<8x32xf32>
    %170 = tpu.matmul %3, %169, %cst_88 {dimension_numbers = #tpu.dot_dimension_numbers<[0], [0], [1], [1], [0, 1, 1, 1], [], []>} : vector<32x8xf32>, vector<32x32xf32>, vector<8x32xf32> -> vector<8x32xf32>
    %cst_89 = arith.constant dense<0.000000e+00> : vector<8x32xf32>
    %171 = tpu.matmul %104, %112, %cst_89 {dimension_numbers = #tpu.dot_dimension_numbers<[1], [0], [0], [1], [0, 0, 1, 1], [], []>} : vector<8x32xf32>, vector<32x32xf32>, vector<8x32xf32> -> vector<8x32xf32>
    %cst_90 = arith.constant dense<0.000000e+00> : vector<8x32xf32>
    %172 = tpu.matmul %170, %114, %cst_90 {dimension_numbers = #tpu.dot_dimension_numbers<[1], [0], [0], [1], [0, 0, 1, 1], [], []>} : vector<8x32xf32>, vector<32x32xf32>, vector<8x32xf32> -> vector<8x32xf32>
    %173 = arith.addf %171, %172 : vector<8x32xf32>
    %c6_91 = arith.constant 6 : index
    %c0_92 = arith.constant 0 : index
    %174 = vector.load %arg10[%c6_91, %c0_92] : memref<10x32xf32, #tpu.memory_space<vmem>>, vector<1x32xf32>
    %175 = vector.broadcast %174 : vector<1x32xf32> to vector<8x32xf32>
    %176 = arith.addf %173, %175 : vector<8x32xf32>
    %177 = arith.negf %176 : vector<8x32xf32>
    %178 = math.exp %177 : vector<8x32xf32>
    %cst_93 = arith.constant 1.000000e+00 : f32
    %179 = vector.broadcast %cst_93 : f32 to vector<8x32xf32>
    %180 = arith.addf %179, %178 : vector<8x32xf32>
    %181 = arith.divf %179, %180 : vector<8x32xf32>
    %182 = arith.mulf %176, %181 : vector<8x32xf32>
    %cst_94 = arith.constant dense<0.000000e+00> : vector<8x32xf32>
    %183 = tpu.matmul %182, %116, %cst_94 {dimension_numbers = #tpu.dot_dimension_numbers<[1], [0], [0], [1], [0, 0, 1, 1], [], []>} : vector<8x32xf32>, vector<32x32xf32>, vector<8x32xf32> -> vector<8x32xf32>
    %c7_95 = arith.constant 7 : index
    %c0_96 = arith.constant 0 : index
    %184 = vector.load %arg10[%c7_95, %c0_96] : memref<10x32xf32, #tpu.memory_space<vmem>>, vector<1x32xf32>
    %185 = vector.broadcast %184 : vector<1x32xf32> to vector<8x32xf32>
    %186 = arith.addf %183, %185 : vector<8x32xf32>
    %187 = arith.addf %104, %186 : vector<8x32xf32>
    %188 = vector.broadcast %6 : vector<8x1xf32> to vector<8x32xf32>
    %189 = arith.mulf %187, %188 : vector<8x32xf32>
    %c12 = arith.constant 12 : index
    %c0_97 = arith.constant 0 : index
    %c0_98 = arith.constant 0 : index
    %190 = vector.load %arg7[%c12, %c0_97, %c0_98] : memref<15x32x32xf32, #tpu.memory_space<vmem>>, vector<1x32x32xf32>
    %191 = vector.shape_cast %190 : vector<1x32x32xf32> to vector<32x32xf32>
    %c13 = arith.constant 13 : index
    %c0_99 = arith.constant 0 : index
    %c0_100 = arith.constant 0 : index
    %192 = vector.load %arg7[%c13, %c0_99, %c0_100] : memref<15x32x32xf32, #tpu.memory_space<vmem>>, vector<1x32x32xf32>
    %193 = vector.shape_cast %192 : vector<1x32x32xf32> to vector<32x32xf32>
    %c14 = arith.constant 14 : index
    %c0_101 = arith.constant 0 : index
    %c0_102 = arith.constant 0 : index
    %194 = vector.load %arg7[%c14, %c0_101, %c0_102] : memref<15x32x32xf32, #tpu.memory_space<vmem>>, vector<1x32x32xf32>
    %195 = vector.shape_cast %194 : vector<1x32x32xf32> to vector<32x32xf32>
    %cst_103 = arith.constant dense<0.000000e+00> : vector<32x32xf32>
    %196 = tpu.matmul %3, %189, %cst_103 {dimension_numbers = #tpu.dot_dimension_numbers<[1], [0], [0], [1], [0, 0, 1, 1], [], []>} : vector<32x8xf32>, vector<8x32xf32>, vector<32x32xf32> -> vector<32x32xf32>
    %cst_104 = arith.constant dense<0.000000e+00> : vector<32x32xf32>
    %197 = tpu.matmul %5, %189, %cst_104 {dimension_numbers = #tpu.dot_dimension_numbers<[1], [0], [0], [1], [0, 0, 1, 1], [], []>} : vector<32x8xf32>, vector<8x32xf32>, vector<32x32xf32> -> vector<32x32xf32>
    %cst_105 = arith.constant dense<0.000000e+00> : vector<32x32xf32>
    %198 = tpu.matmul %196, %191, %cst_105 {dimension_numbers = #tpu.dot_dimension_numbers<[1], [0], [0], [1], [0, 0, 1, 1], [], []>} : vector<32x32xf32>, vector<32x32xf32>, vector<32x32xf32> -> vector<32x32xf32>
    %cst_106 = arith.constant dense<0.000000e+00> : vector<32x32xf32>
    %199 = tpu.matmul %197, %193, %cst_106 {dimension_numbers = #tpu.dot_dimension_numbers<[1], [0], [0], [1], [0, 0, 1, 1], [], []>} : vector<32x32xf32>, vector<32x32xf32>, vector<32x32xf32> -> vector<32x32xf32>
    %200 = arith.addf %198, %199 : vector<32x32xf32>
    %c2_107 = arith.constant 2 : index
    %c0_108 = arith.constant 0 : index
    %c0_109 = arith.constant 0 : index
    %201 = vector.load %arg8[%c2_107, %c0_108, %c0_109] : memref<3x2x32xf32, #tpu.memory_space<vmem>>, vector<1x2x32xf32>
    %202 = vector.shape_cast %201 : vector<1x2x32xf32> to vector<2x32xf32>
    %203 = vector.extract_strided_slice %202 {offsets = [0, 0], sizes = [1, 32], strides = [1, 1]} : vector<2x32xf32> to vector<1x32xf32>
    %204 = vector.broadcast %14 : vector<32x1xf32> to vector<32x32xf32>
    %205 = vector.broadcast %203 : vector<1x32xf32> to vector<32x32xf32>
    %206 = arith.mulf %204, %205 : vector<32x32xf32>
    %207 = vector.extract_strided_slice %202 {offsets = [1, 0], sizes = [1, 32], strides = [1, 1]} : vector<2x32xf32> to vector<1x32xf32>
    %208 = vector.broadcast %8 : vector<32x1xf32> to vector<32x32xf32>
    %209 = vector.broadcast %207 : vector<1x32xf32> to vector<32x32xf32>
    %210 = arith.mulf %208, %209 : vector<32x32xf32>
    %211 = arith.addf %206, %210 : vector<32x32xf32>
    %c8_110 = arith.constant 8 : index
    %c0_111 = arith.constant 0 : index
    %212 = vector.load %arg10[%c8_110, %c0_111] : memref<10x32xf32, #tpu.memory_space<vmem>>, vector<1x32xf32>
    %213 = vector.broadcast %212 : vector<1x32xf32> to vector<32x32xf32>
    %214 = arith.addf %211, %213 : vector<32x32xf32>
    %215 = arith.addf %200, %214 : vector<32x32xf32>
    %216 = arith.negf %215 : vector<32x32xf32>
    %217 = math.exp %216 : vector<32x32xf32>
    %cst_112 = arith.constant 1.000000e+00 : f32
    %218 = vector.broadcast %cst_112 : f32 to vector<32x32xf32>
    %219 = arith.addf %218, %217 : vector<32x32xf32>
    %220 = arith.divf %218, %219 : vector<32x32xf32>
    %221 = arith.mulf %215, %220 : vector<32x32xf32>
    %cst_113 = arith.constant dense<0.000000e+00> : vector<32x32xf32>
    %222 = tpu.matmul %221, %195, %cst_113 {dimension_numbers = #tpu.dot_dimension_numbers<[1], [0], [0], [1], [0, 0, 1, 1], [], []>} : vector<32x32xf32>, vector<32x32xf32>, vector<32x32xf32> -> vector<32x32xf32>
    %c9_114 = arith.constant 9 : index
    %c0_115 = arith.constant 0 : index
    %223 = vector.load %arg10[%c9_114, %c0_115] : memref<10x32xf32, #tpu.memory_space<vmem>>, vector<1x32xf32>
    %224 = vector.broadcast %223 : vector<1x32xf32> to vector<32x32xf32>
    %225 = arith.addf %222, %224 : vector<32x32xf32>
    %226 = arith.negf %225 : vector<32x32xf32>
    %227 = math.exp %226 : vector<32x32xf32>
    %cst_116 = arith.constant 1.000000e+00 : f32
    %228 = vector.broadcast %cst_116 : f32 to vector<32x32xf32>
    %229 = arith.addf %228, %227 : vector<32x32xf32>
    %230 = arith.divf %228, %229 : vector<32x32xf32>
    %231 = arith.mulf %225, %230 : vector<32x32xf32>
    %c2_117 = arith.constant 2 : index
    %c0_118 = arith.constant 0 : index
    %232 = vector.load %arg9[%c2_117, %c0_118] : memref<3x32xf32, #tpu.memory_space<vmem>>, vector<1x32xf32>
    %233 = vector.broadcast %232 : vector<1x32xf32> to vector<32x32xf32>
    %234 = arith.mulf %231, %233 : vector<32x32xf32>
    %cst_119 = arith.constant dense<0.000000e+00> : vector<32xf32>
    %235 = vector.multi_reduction <add>, %234, %cst_119 [1] : vector<32x32xf32> to vector<32xf32>
    %236 = vector.shape_cast %235 : vector<32xf32> to vector<32x1xf32>
    %237 = vector.broadcast %236 : vector<32x1xf32> to vector<32x3xf32>
    %238 = arith.mulf %19, %237 : vector<32x3xf32>
    %239 = vector.broadcast %7 : vector<32x1xf32> to vector<32x3xf32>
    %240 = arith.mulf %238, %239 : vector<32x3xf32>
    %cst_120 = arith.constant dense<0.000000e+00> : vector<8x3xf32>
    %241 = tpu.matmul %3, %240, %cst_120 {dimension_numbers = #tpu.dot_dimension_numbers<[0], [0], [1], [1], [0, 1, 1, 1], [], []>} : vector<32x8xf32>, vector<32x3xf32>, vector<8x3xf32> -> vector<8x3xf32>
    %242 = arith.addf %1, %241 : vector<8x3xf32>
    %243 = vector.broadcast %6 : vector<8x1xf32> to vector<8x3xf32>
    %244 = arith.mulf %242, %243 : vector<8x3xf32>
    %245 = vector.broadcast %6 : vector<8x1xf32> to vector<8x32xf32>
    %246 = arith.mulf %189, %245 : vector<8x32xf32>
    %c0_121 = arith.constant 0 : index
    %c0_122 = arith.constant 0 : index
    %247 = vector.load %arg12[%c0_121, %c0_122] : memref<8x32xf32, #tpu.memory_space<vmem>>, vector<8x32xf32>
    tpu.vector_store %arg12[%c0_121, %c0_122], %246 {strides = array<i32>} : memref<8x32xf32, #tpu.memory_space<vmem>>, vector<8x32xf32>,
    %c0_123 = arith.constant 0 : index
    %c0_124 = arith.constant 0 : index
    %248 = vector.load %arg13[%c0_123, %c0_124] : memref<8x3xf32, #tpu.memory_space<vmem>>, vector<8x3xf32>
    tpu.vector_store %arg13[%c0_123, %c0_124], %244 {strides = array<i32>} : memref<8x3xf32, #tpu.memory_space<vmem>>, vector<8x3xf32>,
    return
  }
}

</mosaic_0001>

<bundles_post_ra>
// kernel: tpu_custom_call.1
= control target key start
LH: loop header
LB: loop body
LE: loop exit
PB: predicated region body
PF: predicated region fallthrough
CT: control target
= control target key end

     0   :  { %19 = vsyncpa [#allocation3], 0  ;;  %s3049_s0 = inlined_call_operand.vmem [shape: f32[8,32], index: 0, kind: input, shape index: {}]   ;;  %s3050_s1 = inlined_call_operand.vmem [shape: f32[8,3], index: 1, kind: input, shape index: {}]   ;;  %s3051_s2 = inlined_call_operand.vmem [shape: bf16[32,8], index: 2, kind: input, shape index: {}]   ;;  %s3052_s3 = inlined_call_operand.vmem [shape: bf16[32,8], index: 3, kind: input, shape index: {}]   ;;  %s3053_s4 = inlined_call_operand.vmem [shape: f32[8,1], index: 4, kind: input, shape index: {}]   ;;  %s3054_s5 = inlined_call_operand.vmem [shape: f32[32,1], index: 5, kind: input, shape index: {}]   ;;  %s3055_s6 = inlined_call_operand.vmem [shape: f32[32,1], index: 6, kind: input, shape index: {}]   ;;  %s3056_s7 = inlined_call_operand.hbm [shape: f32[15,32,32], index: 7, kind: input, shape index: {}]   ;;  %s3057_s8 = inlined_call_operand.vmem [shape: f32[3,2,32], index: 8, kind: input, shape index: {}]   ;;  %s3058_s9 = inlined_call_operand.vmem [shape: f32[3,32], index: 9, kind: input, shape index: {}]   ;;  %s3059_s10 = inlined_call_operand.vmem [shape: f32[10,32], index: 10, kind: input, shape index: {}]   ;;  %s3060_s11 = inlined_call_operand.vmem [shape: f32[2], index: 11, kind: input, shape index: {}]   ;;  %s3061_s12 = inlined_call_operand.hbm [shape: f32[8,32], index: 12, kind: output, shape index: {0}]   ;;  %s3062_s13 = inlined_call_operand.vmem [shape: f32[8,3], index: 13, kind: output, shape index: {1}]  }
   0x1   :  { %20 = vsyncpa [#allocation5], 0 }
   0x2   :  { %21 = vsyncpa [#allocation4], 0  ;;  %s40_s27 = sshll.u32 %s3056_s7, 4  ;;  %s2402_s28 = smov [#allocation2]   ;;  %s41_s27 = int_to_ptr.hbm [resolvable:$true] %s40_s27 }
   0x3   :  { %s42_s29 = sshll.u32 %s2402_s28, 4  ;;  %s60_s15 = sshll.u32 %s3060_s11, 4  ;;  %s43_s29 = int_to_ptr.vmem [resolvable:$true] %s42_s29  ;;  %s61_s15 = int_to_ptr.vmem [resolvable:$true] %s60_s15 }
   0x4   :  { %s2403_s16 = smov 128   ;;  %s2404_s17 = smov 8  }
   0x5   :  { %48 = dma.hbm_to_vmem [thread:$0]  %s41_s27, 7680, %s43_s29, [#allocation3], %s2403_s16, %s2403_s16, %s2404_s17  }
   0x6   :  { %s2405_s18 = smov [#allocation6]  }
   0x7   :  { %63 = dma.vmem_to_smem %s61_s15, 16, %s2405_s18, [#allocation5]  }
   0x8   :  { %2396 = dma.done.wait [#allocation3], 7680  }
   0x9   :  { %2397 = vsyncadd [#allocation3], 4294959616 }
   0xa   :  { %2398 = dma.done.wait [#allocation5], 16  }
   0xb   :  { %2399 = vsyncadd [#allocation5], 4294967280 }
   0xc   :  { %72 = sfence }
   0xd   :  { %v74_v0 = vld [vmem:[%s3050_s1] sm:$0xff]  ;;  %vm100_vm0 = vcmask 64512   ;;  %v97_v7 = vld [vmem:[%s3055_s6 + $0x8] sm:$0xff]  ;;  %v98_v8 = vld [vmem:[%s3055_s6 + $0x10] sm:$0xff]  ;;  %v2406_v9 = vmov 0   ;;  %vm191_vm1 = vcmask 23552  }
   0xe   :  { %v2149_v1 = vld [vmem:[%s3051_s2] sm:$0xff]   ;;  %128 = vmatpush.msra.mxu0 %v74_v0  ;;  %169 = vmatpush.msra.mxu1 %v74_v0  ;;  %v2164_v11 = vld [vmem:[%s3051_s2 + $0x8] sm:$0xff]   ;;  %v260_v17 = vld [vmem:[#allocation2 + $0x38] sm:$0xff]  ;;  %vm339_vm2 = vcmask 261120   ;;  %s688_s17 = sld [smem:[#allocation6]]  ;;  %s2407_s16 = smov [#allocation7]  }
   0xf   :  { %v2157_v2 = vld [vmem:[%s3052_s3] sm:$0xff]   ;;  %v2493_v3 = vunpack.c.l.bf16 %v2149_v1  ;;  %v2508_v6 = vunpack.c.h.bf16 %v2149_v1  ;;  %2175 = vset.pattern.permute.xlu1 %v2406_v9  ;;  %2176 = vset.pattern.permute.xlu2 %v2406_v9  ;;  %v2530_v12 = vunpack.c.l.bf16 %v2164_v11  ;;  %v2165_v13 = vld [vmem:[%s3052_s3 + $0x8] sm:$0xff]   ;;  %v2545_v15 = vunpack.c.h.bf16 %v2164_v11  ;;  %v255_v18 = vld [vmem:[#allocation2 + $0x18] sm:$0xff]  ;;  %s2108_s24 = sld [smem:[#allocation6 + $0x1]]  ;;  %s2019_s3 = sshll.u32 %s3061_s12, 4  ;;  %s2020_s3 = int_to_ptr.hbm [resolvable:$true] %s2019_s3 }
  0x10   :  { %v2495_v4 = vunpack.c.l.bf16 %v2157_v2  ;;  %v2500_v5 = vld [vmem:[%s3049_s0] sm:$0xff]  ;;  %435 = vperm.xlu1 %2175, %v97_v7   ;;  %v2521_v10 = vunpack.c.h.bf16 %v2157_v2  ;;  %440 = vperm.xlu2 %2176, %v98_v8   ;;  %v2539_v14 = vunpack.c.l.bf16 %v2165_v13  ;;  %v2551_v16 = vunpack.c.h.bf16 %v2165_v13  ;;  %v259_v19 = vld [vmem:[#allocation2 + $0x30] sm:$0xff]  ;;  %v258_v21 = vld [vmem:[#allocation2 + $0x28] sm:$0xff] }
  0x11   :  { %325 = vmatpush.msra.mxu3 %v2500_v5  ;;  %296 = vmatpush.msrb.mxu1 %v2500_v5  ;;  %v254_v20 = vld [vmem:[#allocation2 + $0x10] sm:$0xff]  ;;  %v253_v22 = vld [vmem:[#allocation2 + $0x8] sm:$0xff]  ;;  %v257_v23 = vld [vmem:[#allocation2 + $0x20] sm:$0xff] }
  0x12   :  { %2034 = vmatmul.msk.f32.vlgmr.msra.gmra.mxu0 %vm100_vm0, %v2493_v3  ;;  %2038 = vmatmul.msk.f32.vlgmr.msra.gmra.mxu1 %vm100_vm0, %v2495_v4  ;;  %v252_v24 = vld [vmem:[#allocation2] sm:$0xff]  ;;  %v93_v49 = vld [vmem:[%s3054_s5 + $0x8] sm:$0xff]  ;;  %v99_v53 = vld [vmem:[%s3055_s6 + $0x18] sm:$0xff] }
  0x13   :  { %2046 = vmatmul.msk.f32.vlgmr.msra.gmra.mxu3 %vm100_vm0, %v2495_v4  ;;  %2166 = vmatpush.msra.mxu2 %v2500_v5  ;;  %v96_v42 = vld [vmem:[%s3055_s6] sm:$0xff]  ;;  %v95_v54 = vld [vmem:[%s3054_s5 + $0x18] sm:$0xff] }
  0x14   :  { %2043 = vmatmul.msk.f32.vlgmr.msra.gmra.mxu2 %vm100_vm0, %v2508_v6  ;;  %2174 = vset.pattern.permute.xlu0 %v2406_v9  ;;  %v2095_v58 = vld [vmem:[%s3057_s8 + $0x2] sm:$0x3]  ;;  %v2134_v59 = vld [vmem:[%s3057_s8 + $0x4] sm:$0x3]  ;;  %v422_v13 = vld [vmem:[%s3057_s8] sm:$0x3] }
  0x15   :  { %364 = vmatpush.msrb.mxu0 %v260_v17  ;;  %405 = vmatpush.msra.mxu1 %v255_v18  ;;  %v2609_v60 = vperm.slane %v2095_v58, 0  ;;  %v2611_v61 = vperm.slane %v2134_v59, 0  ;;  %v2613_v62 = vperm.slane %v2095_v58, 1  ;;  %v2615_v63 = vperm.slane %v2134_v59, 1 }
  0x16   :  { %v423_v18 = vperm.slane %v422_v13, 0 }
  0x17   :  { %365 = vmatpush.msrb.mxu0 %v259_v19  ;;  %406 = vmatpush.msra.mxu1 %v254_v20  ;;  %v448_v19 = vperm.slane %v422_v13, 1 }
  0x19   :  { %366 = vmatpush.msrb.mxu0 %v258_v21  ;;  %407 = vmatpush.msra.mxu1 %v253_v22 }
  0x1a   :  { %2035 = vmatmul.msk.f32.gmra.mxu0 %vm100_vm0, %v2508_v6  ;;  %2039 = vmatmul.msk.f32.gmra.mxu1 %vm100_vm0, %v2521_v10 }
  0x1b   :  { %2047 = vmatmul.msk.f32.gmra.mxu3 %vm100_vm0, %v2521_v10  ;;  %367 = vmatpush.msrb.mxu0 %v257_v23  ;;  %v265_v23 = vld [vmem:[#allocation2 + $0x58] sm:$0xff] }
  0x1c   :  { %2044 = vmatmul.msk.f32.gmra.mxu2 %vm100_vm0, %v2530_v12  ;;  %408 = vmatpush.msra.mxu1 %v252_v24 }
  0x1d   :  { %573 = vmatpush.msrb.mxu2 %v265_v23 }
  0x22   :  { %2036 = vmatmul.msk.f32.gmra.mxu0 %vm100_vm0, %v2530_v12  ;;  %2040 = vmatmul.msk.f32.gmra.mxu1 %vm100_vm0, %v2539_v14 }
  0x23   :  { %2048 = vmatmul.msk.f32.gmra.mxu3 %vm100_vm0, %v2539_v14 }
  0x24   :  { %2045 = vmatmul.msk.f32.gmra.mxu2 %vm100_vm0, %v2545_v15 }
  0x2a   :  { %2037 = vmatmul.msk.f32.gmra.mxu0 %vm100_vm0, %v2545_v15  ;;  %2041 = vmatmul.msk.f32.gmra.mxu1 %vm100_vm0, %v2551_v16 }
  0x2b   :  { %2049 = vmatmul.msk.f32.gmra.mxu3 %vm100_vm0, %v2551_v16 }
  0x32   :  { %2042 = vmatmul.msk.f32.vlgmr.msrb.gmra.mxu1 %vm100_vm0, %v2493_v3 }
  0x82   :  { %v2630_v17 = vpop.permute.xlu1 %435 }
  0x8f   :  { %v130_v25 = vpop.f32.mrf.mxu0  ;;  %v171_v26 = vpop.f32.mrf.mxu1 }
  0x90   :  { %v2561_v27 = vsub.f32 %v130_v25, %v171_v26  ;;  %v264_v25 = vld [vmem:[#allocation2 + $0x50] sm:$0xff]  ;;  %v2633_v26 = vpop.permute.xlu2 %440 }
  0x91   :  { %574 = vmatpush.msrb.mxu2 %v264_v25 }
  0x92   :  { %v187_v28 = vmul.f32 %v2561_v27, %v2561_v27 }
  0x94   :  { %v192_v29 = vsel %vm191_vm1, %v187_v28, 0.0 }
  0x95   :  { %193 = vadd.xlane.f32.xlu0 %v192_v29  ;;  %v2177_v29 = vld [vmem:[%s3059_s10] ss:$0 sm:$0xff] }
  0x96   :  { %v327_v30 = vpop.f32.mrf.mxu3 }
  0x97   :  { %v133_v31 = vpop.f32.mrf.mxu0  ;;  %v174_v32 = vpop.f32.mrf.mxu1  ;;  %2050 = vmatmul.msk.f32.vlgmr.msrb.gmra.mxu0 %vm339_vm2, %v327_v30  ;;  %v263_v30 = vld [vmem:[#allocation2 + $0x48] sm:$0xff] }
  0x98   :  { %v2567_v33 = vsub.f32 %v133_v31, %v174_v32  ;;  %v301_v52 = vpop.f32.mrf.mxu2  ;;  %575 = vmatpush.msrb.mxu2 %v263_v30 }
  0x9a   :  { %v188_v34 = vmul.f32 %v2567_v33, %v2567_v33 }
  0x9c   :  { %v195_v35 = vsel %vm191_vm1, %v188_v34, 0.0 }
  0x9d   :  { %196 = vadd.xlane.f32.xlu1 %v195_v35 }
  0x9e   :  { %v330_v36 = vpop.f32.mrf.mxu3 }
  0x9f   :  { %v136_v37 = vpop.f32.mrf.mxu0  ;;  %v177_v38 = vpop.f32.mrf.mxu1  ;;  %2051 = vmatmul.msk.f32.gmra.mxu0 %vm339_vm2, %v330_v36  ;;  %v262_v36 = vld [vmem:[#allocation2 + $0x40] sm:$0xff] }
  0xa0   :  { %v2573_v39 = vsub.f32 %v136_v37, %v177_v38  ;;  %v304_v55 = vpop.f32.mrf.mxu2  ;;  %576 = vmatpush.msrb.mxu2 %v262_v36  ;;  %v450_v38 = vmul.f32 %v448_v19, %v2630_v17 }
  0xa2   :  { %v189_v40 = vmul.f32 %v2573_v39, %v2573_v39 }
  0xa4   :  { %v198_v41 = vsel %vm191_vm1, %v189_v40, 0.0 }
  0xa5   :  { %199 = vadd.xlane.f32.xlu2 %v198_v41 }
  0xa6   :  { %v333_v43 = vpop.f32.mrf.mxu3 }
  0xa7   :  { %v139_v44 = vpop.f32.mrf.mxu0  ;;  %v180_v45 = vpop.f32.mrf.mxu1  ;;  %2052 = vmatmul.msk.f32.gmra.mxu0 %vm339_vm2, %v333_v43 }
  0xa8   :  { %v2582_v46 = vsub.f32 %v139_v44, %v180_v45  ;;  %v307_v56 = vpop.f32.mrf.mxu2 }
  0xa9   :  { %430 = vperm.xlu0 %2174, %v96_v42  }
  0xaa   :  { %v190_v47 = vmul.f32 %v2582_v46, %v2582_v46 }
  0xac   :  { %v201_v48 = vsel %vm191_vm1, %v190_v47, 0.0 }
  0xad   :  { %202 = vadd.xlane.f32.xlu2 %v201_v48 }
  0xae   :  { %v336_v50 = vpop.f32.mrf.mxu3 }
  0xaf   :  { %v298_v51 = vpop.f32.mrf.mxu1  ;;  %2053 = vmatmul.msk.f32.gmra.mxu0 %vm339_vm2, %v336_v50 }
  0xb0   :  { %2054 = vmatmul.msk.f32.vlgmr.msra.gmra.mxu1 %vm339_vm2, %v298_v51 }
  0xb1   :  { %781 = vperm.xlu0 %2174, %v93_v49   ;;  %v451_v49 = vmul.f32 %v448_v19, %v2633_v26 }
  0xb6   :  { %445 = vperm.xlu1 %2175, %v99_v53  }
  0xb8   :  { %2055 = vmatmul.msk.f32.gmra.mxu1 %vm339_vm2, %v301_v52 }
  0xbe   :  { %791 = vperm.xlu1 %2175, %v95_v54  }
  0xc0   :  { %2056 = vmatmul.msk.f32.gmra.mxu1 %vm339_vm2, %v304_v55 }
  0xc8   :  { %2057 = vmatmul.msk.f32.gmra.mxu1 %vm339_vm2, %v307_v56 }
 0x108   :  { %v2601_v57 = vpop.xlane.xlu0 %193 }
 0x109   :  { %v1127_v1 = vmul.f32 %v2609_v60, %v2601_v57  ;;  %v1735_v2 = vmul.f32 %v2611_v61, %v2601_v57  ;;  %v424_v22 = vmul.f32 %v423_v18, %v2601_v57 }
 0x110   :  { %v2635_v28 = vpop.xlane.xlu1 %196 }
 0x111   :  { %v425_v32 = vmul.f32 %v423_v18, %v2635_v28 }
 0x113   :  { %v454_v42 = vadd.f32 %v450_v38, %v425_v32 }
 0x114   :  { %v369_v20 = vpop.f32.mrf.mxu0 }
 0x115   :  { %v460_v48 = vadd.f32 %v2177_v29, %v454_v42 }
 0x118   :  { %v2642_v43 = vpop.xlane.xlu2 %199 }
 0x119   :  { %v426_v45 = vmul.f32 %v423_v18, %v2642_v43 }
 0x11b   :  { %v431_v0 = vpop.permute.xlu0 %430  ;;  %v455_v54 = vadd.f32 %v451_v49, %v426_v45 }
 0x11c   :  { %v1132_v7 = vmul.f32 %v2613_v62, %v431_v0  ;;  %v1740_v8 = vmul.f32 %v2615_v63, %v431_v0  ;;  %v449_v21 = vmul.f32 %v448_v19, %v431_v0  ;;  %v372_v37 = vpop.f32.mrf.mxu0 }
 0x11e   :  { %v2623_v9 = vadd.f32 %v1132_v7, %v1127_v1  ;;  %v2625_v11 = vadd.f32 %v1740_v8, %v1735_v2  ;;  %v453_v24 = vadd.f32 %v449_v21, %v424_v22  ;;  %v461_v2 = vadd.f32 %v2177_v29, %v455_v54 }
 0x120   :  { %v459_v35 = vadd.f32 %v2177_v29, %v453_v24  ;;  %v2651_v58 = vpop.xlane.xlu2 %202 }
 0x121   :  { %v427_v7 = vmul.f32 %v423_v18, %v2651_v58 }
 0x124   :  { %v375_v51 = vpop.f32.mrf.mxu0 }
 0x128   :  { %v2649_v55 = vpop.permute.xlu1 %445 }
 0x129   :  { %v452_v0 = vmul.f32 %v448_v19, %v2649_v55 }
 0x12c   :  { %v378_v24 = vpop.f32.mrf.mxu0 }
 0x12d   :  { %v410_v31 = vpop.f32.mrf.mxu1 }
 0x12e   :  { %v411_v34 = vadd.f32 %v410_v31, %v369_v20  ;;  %v456_v20 = vadd.f32 %v452_v0, %v427_v7 }
 0x130   :  { %v463_v40 = vadd.f32 %v459_v35, %v411_v34  ;;  %v462_v19 = vadd.f32 %v2177_v29, %v456_v20 }
 0x132   :  { %v2058_v41 = vmul.f32 -1.442695, %v463_v40 }
 0x134   :  { %2190 = vpow2.f32 %v2058_v41 }
 0x135   :  { %v413_v44 = vpop.f32.mrf.mxu1 }
 0x136   :  { %v414_v47 = vadd.f32 %v413_v44, %v372_v37 }
 0x138   :  { %v2646_v50 = vadd.f32 %v460_v48, %v414_v47 }
 0x13a   :  { %v2191_v52 = vpop.eup %2190  ;;  %v2059_v53 = vmul.f32 -1.442695, %v2646_v50 }
 0x13b   :  { %v479_v56 = vadd.f32 1.0, %v2191_v52 }
 0x13c   :  { %2192 = vpow2.f32 %v2059_v53 }
 0x13d   :  { %2194 = vrcp.f32 %v479_v56  ;;  %v416_v59 = vpop.f32.mrf.mxu1  ;;  %v494_v34 = vand.u32 2147483648, %v479_v56  ;;  %v492_v18 = vand.u32 2147483647, %v479_v56  ;;  %vm488_vm4 = vweird.f32 %v479_v56 }
 0x13e   :  { %v417_v1 = vadd.f32 %v416_v59, %v375_v51 }
 0x13f   :  { %v495_v44 = vor.u32 1.1754944e-38, %v494_v34  ;;  %vm493_vm6 = vcmp.eq.f32.partialorder %v492_v18, 8.507059e+37 }
 0x140   :  { %v2655_v8 = vadd.f32 %v461_v2, %v417_v1 }
 0x142   :  { %v2193_v13 = vpop.eup %2192  ;;  %v2060_v21 = vmul.f32 -1.442695, %v2655_v8 }
 0x143   :  { %v2195_v22 = vpop.eup %2194  ;;  %v480_v23 = vadd.f32 1.0, %v2193_v13 }
 0x144   :  { %v484_v25 = vmul.f32 %v2195_v22, %v479_v56  ;;  %2196 = vpow2.f32 %v2060_v21  ;;  %vm489_vm3 = vweird.f32 %v2195_v22 }
 0x145   :  { %2198 = vrcp.f32 %v480_v23  ;;  %v419_v30 = vpop.f32.mrf.mxu1  ;;  %vm490_vm5 = vmor %vm488_vm4, %vm489_vm3  ;;  %v509_v52 = vand.u32 2147483648, %v480_v23  ;;  %v507_v54 = vand.u32 2147483647, %v480_v23  ;;  %vm503_vm8 = vweird.f32 %v480_v23 }
 0x146   :  { %v485_v31 = vsub.f32 1.0, %v484_v25  ;;  %v420_v32 = vadd.f32 %v419_v30, %v378_v24 }
 0x147   :  { %v510_v2 = vor.u32 1.1754944e-38, %v509_v52  ;;  %vm508_vm10 = vcmp.eq.f32.partialorder %v507_v54, 8.507059e+37 }
 0x148   :  { %v486_v35 = vmul.f32 %v2195_v22, %v485_v31  ;;  %v2658_v36 = vadd.f32 %v462_v19, %v420_v32 }
 0x14a   :  { %v2197_v37 = vpop.eup %2196  ;;  %v487_v38 = vadd.f32 %v2195_v22, %v486_v35  ;;  %v2061_v41 = vmul.f32 -1.442695, %v2658_v36 }
 0x14b   :  { %v2199_v42 = vpop.eup %2198  ;;  %v481_v45 = vadd.f32 1.0, %v2197_v37 }
 0x14c   :  { %v491_v47 = vsel %vm490_vm5, %v2195_v22, %v487_v38  ;;  %2200 = vpow2.f32 %v2061_v41  ;;  %v499_v48 = vmul.f32 %v2199_v42, %v480_v23  ;;  %vm504_vm7 = vweird.f32 %v2199_v42 }
 0x14d   :  { %v496_v29 = vsel %vm493_vm6, %v495_v44, %v491_v47  ;;  %2202 = vrcp.f32 %v481_v45  ;;  %vm505_vm9 = vmor %vm503_vm8, %vm504_vm7  ;;  %v524_v22 = vand.u32 2147483648, %v481_v45  ;;  %v522_v25 = vand.u32 2147483647, %v481_v45 }
 0x14e   :  { %v543_v49 = vmul.f32 %v496_v29, %v463_v40  ;;  %v500_v51 = vsub.f32 1.0, %v499_v48  ;;  %vm518_vm12 = vweird.f32 %v481_v45 }
 0x14f   :  { %v525_v31 = vor.u32 1.1754944e-38, %v524_v22  ;;  %vm523_vm14 = vcmp.eq.f32.partialorder %v522_v25, 8.507059e+37 }
 0x150   :  { %2062 = vmatmul.msk.f32.vlgmr.msrb.gmra.mxu2 %vm339_vm2, %v543_v49  ;;  %v501_v53 = vmul.f32 %v2199_v42, %v500_v51 }
 0x152   :  { %v2201_v56 = vpop.eup %2200  ;;  %v502_v59 = vadd.f32 %v2199_v42, %v501_v53 }
 0x153   :  { %v2203_v0 = vpop.eup %2202  ;;  %v482_v1 = vadd.f32 1.0, %v2201_v56 }
 0x154   :  { %v506_v7 = vsel %vm505_vm9, %v2199_v42, %v502_v59  ;;  %v514_v13 = vmul.f32 %v2203_v0, %v481_v45  ;;  %vm519_vm11 = vweird.f32 %v2203_v0 }
 0x155   :  { %2204 = vrcp.f32 %v482_v1  ;;  %v511_v20 = vsel %vm508_vm10, %v510_v2, %v506_v7  ;;  %vm520_vm13 = vmor %vm518_vm12, %vm519_vm11  ;;  %v537_v38 = vand.u32 2147483647, %v482_v1  ;;  %vm533_vm3 = vweird.f32 %v482_v1 }
 0x156   :  { %v544_v40 = vmul.f32 %v511_v20, %v2646_v50  ;;  %v515_v21 = vsub.f32 1.0, %v514_v13  ;;  %v539_v50 = vand.u32 2147483648, %v482_v1 }
 0x157   :  { %vm538_vm5 = vcmp.eq.f32.partialorder %v537_v38, 8.507059e+37 }
 0x158   :  { %2063 = vmatmul.msk.f32.gmra.mxu2 %vm339_vm2, %v544_v40  ;;  %v516_v24 = vmul.f32 %v2203_v0, %v515_v21  ;;  %v540_v42 = vor.u32 1.1754944e-38, %v539_v50  ;;  %v2179_v50 = vld [vmem:[%s3058_s9] ss:$0 sm:$0xff] }
 0x15a   :  { %v517_v30 = vadd.f32 %v2203_v0, %v516_v24 }
 0x15b   :  { %v2205_v23 = vpop.eup %2204 }
 0x15c   :  { %v521_v32 = vsel %vm520_vm13, %v2203_v0, %v517_v30  ;;  %v529_v19 = vmul.f32 %v2205_v23, %v482_v1  ;;  %vm534_vm15 = vweird.f32 %v2205_v23 }
 0x15d   :  { %v526_v34 = vsel %vm523_vm14, %v525_v31, %v521_v32  ;;  %vm535_vm4 = vmor %vm533_vm3, %vm534_vm15 }
 0x15e   :  { %v545_v35 = vmul.f32 %v526_v34, %v2655_v8  ;;  %v530_v18 = vsub.f32 1.0, %v529_v19  ;;  %v2178_v8 = vld [vmem:[%s3059_s10 + $0x1] ss:$0 sm:$0xff] }
 0x160   :  { %2064 = vmatmul.msk.f32.gmra.mxu2 %vm339_vm2, %v545_v35  ;;  %v531_v37 = vmul.f32 %v2205_v23, %v530_v18 }
 0x162   :  { %v532_v41 = vadd.f32 %v2205_v23, %v531_v37 }
 0x164   :  { %v536_v44 = vsel %vm535_vm4, %v2205_v23, %v532_v41 }
 0x165   :  { %v541_v45 = vsel %vm538_vm5, %v540_v42, %v536_v44 }
 0x166   :  { %v546_v47 = vmul.f32 %v541_v45, %v2658_v36 }
 0x168   :  { %2065 = vmatmul.msk.f32.gmra.mxu2 %vm339_vm2, %v546_v47 }
 0x1d3   :  { %v578_v48 = vpop.f32.mrf.mxu2 }
 0x1d4   :  { %v579_v29 = vadd.f32 %v2178_v8, %v578_v48 }
 0x1d6   :  { %v2066_v49 = vmul.f32 -1.442695, %v579_v29 }
 0x1d8   :  { %2206 = vpow2.f32 %v2066_v49 }
 0x1db   :  { %v581_v51 = vpop.f32.mrf.mxu2 }
 0x1dc   :  { %v582_v52 = vadd.f32 %v2178_v8, %v581_v51 }
 0x1de   :  { %v2207_v53 = vpop.eup %2206  ;;  %v2067_v54 = vmul.f32 -1.442695, %v582_v52 }
 0x1df   :  { %v602_v56 = vadd.f32 1.0, %v2207_v53 }
 0x1e0   :  { %2208 = vpow2.f32 %v2067_v54 }
 0x1e1   :  { %2210 = vrcp.f32 %v602_v56  ;;  %v617_v40 = vand.u32 2147483648, %v602_v56  ;;  %v615_v24 = vand.u32 2147483647, %v602_v56  ;;  %vm611_vm7 = vweird.f32 %v602_v56 }
 0x1e3   :  { %v584_v59 = vpop.f32.mrf.mxu2  ;;  %v618_v19 = vor.u32 1.1754944e-38, %v617_v40  ;;  %vm616_vm9 = vcmp.eq.f32.partialorder %v615_v24, 8.507059e+37 }
 0x1e4   :  { %v2671_v0 = vadd.f32 %v2178_v8, %v584_v59 }
 0x1e6   :  { %v2209_v36 = vpop.eup %2208  ;;  %v2068_v1 = vmul.f32 -1.442695, %v2671_v0 }
 0x1e7   :  { %v2211_v2 = vpop.eup %2210  ;;  %v603_v7 = vadd.f32 1.0, %v2209_v36 }
 0x1e8   :  { %v607_v13 = vmul.f32 %v2211_v2, %v602_v56  ;;  %2212 = vpow2.f32 %v2068_v1  ;;  %vm612_vm6 = vweird.f32 %v2211_v2 }
 0x1e9   :  { %2214 = vrcp.f32 %v603_v7  ;;  %vm613_vm8 = vmor %vm611_vm7, %vm612_vm6  ;;  %v632_v42 = vand.u32 2147483648, %v603_v7  ;;  %v630_v45 = vand.u32 2147483647, %v603_v7  ;;  %vm626_vm11 = vweird.f32 %v603_v7 }
 0x1ea   :  { %v608_v20 = vsub.f32 1.0, %v607_v13 }
 0x1eb   :  { %v587_v21 = vpop.f32.mrf.mxu2  ;;  %v633_v53 = vor.u32 1.1754944e-38, %v632_v42  ;;  %vm631_vm13 = vcmp.eq.f32.partialorder %v630_v45, 8.507059e+37 }
 0x1ec   :  { %v609_v22 = vmul.f32 %v2211_v2, %v608_v20  ;;  %v2674_v25 = vadd.f32 %v2178_v8, %v587_v21 }
 0x1ee   :  { %v2213_v30 = vpop.eup %2212  ;;  %v610_v23 = vadd.f32 %v2211_v2, %v609_v22  ;;  %v2069_v31 = vmul.f32 -1.442695, %v2674_v25 }
 0x1ef   :  { %v2215_v32 = vpop.eup %2214  ;;  %v604_v34 = vadd.f32 1.0, %v2213_v30 }
 0x1f0   :  { %v614_v35 = vsel %vm613_vm8, %v2211_v2, %v610_v23  ;;  %v622_v18 = vmul.f32 %v2215_v32, %v603_v7  ;;  %2216 = vpow2.f32 %v2069_v31  ;;  %vm627_vm10 = vweird.f32 %v2215_v32 }
 0x1f1   :  { %v619_v37 = vsel %vm616_vm9, %v618_v19, %v614_v35  ;;  %2218 = vrcp.f32 %v604_v34  ;;  %vm628_vm12 = vmor %vm626_vm11, %vm627_vm10  ;;  %v647_v2 = vand.u32 2147483648, %v604_v34  ;;  %v645_v20 = vand.u32 2147483647, %v604_v34 }
 0x1f2   :  { %v2680_v38 = vmul.f32 %v619_v37, %v579_v29  ;;  %v623_v41 = vsub.f32 1.0, %v622_v18  ;;  %vm641_vm15 = vweird.f32 %v604_v34 }
 0x1f3   :  { %v648_v24 = vor.u32 1.1754944e-38, %v647_v2  ;;  %vm646_vm4 = vcmp.eq.f32.partialorder %v645_v20, 8.507059e+37  ;;  %v2713_v2 = vpop.permute.xlu1 %791 }
 0x1f4   :  { %v624_v44 = vmul.f32 %v2215_v32, %v623_v41  ;;  %v672_v47 = vmul.f32 %v2179_v50, %v2680_v38 }
 0x1f6   :  { %v2217_v8 = vpop.eup %2216  ;;  %v625_v48 = vadd.f32 %v2215_v32, %v624_v44  ;;  %v676_v49 = vsel %vm339_vm2, %v672_v47, 0.0 }
 0x1f7   :  { %v2219_v51 = vpop.eup %2218  ;;  %v605_v54 = vadd.f32 1.0, %v2217_v8  ;;  %677 = vadd.xlane.f32.xlu2 %v676_v49  ;;  %v91_v49 = vld [vmem:[%s3053_s4] sm:$0xff] }
 0x1f8   :  { %v629_v56 = vsel %vm628_vm12, %v2215_v32, %v625_v48  ;;  %v637_v29 = vmul.f32 %v2219_v51, %v604_v34  ;;  %vm642_vm14 = vweird.f32 %v2219_v51  ;;  %v94_v48 = vld [vmem:[%s3054_s5 + $0x10] sm:$0xff] }
 0x1f9   :  { %v634_v59 = vsel %vm631_vm13, %v633_v53, %v629_v56  ;;  %2220 = vrcp.f32 %v605_v54  ;;  %vm643_vm3 = vmor %vm641_vm15, %vm642_vm14  ;;  %v662_v19 = vand.u32 2147483648, %v605_v54  ;;  %v660_v18 = vand.u32 2147483647, %v605_v54 }
 0x1fa   :  { %v2684_v36 = vmul.f32 %v634_v59, %v582_v52  ;;  %v638_v1 = vsub.f32 1.0, %v637_v29  ;;  %vm656_vm6 = vweird.f32 %v605_v54 }
 0x1fb   :  { %v663_v42 = vor.u32 1.1754944e-38, %v662_v19  ;;  %vm661_vm8 = vcmp.eq.f32.partialorder %v660_v18, 8.507059e+37 }
 0x1fc   :  { %v639_v13 = vmul.f32 %v2219_v51, %v638_v1  ;;  %v673_v7 = vmul.f32 %v2179_v50, %v2684_v36 }
 0x1fe   :  { %v640_v40 = vadd.f32 %v2219_v51, %v639_v13  ;;  %v679_v21 = vsel %vm339_vm2, %v673_v7, 0.0 }
 0x1ff   :  { %v2221_v22 = vpop.eup %2220  ;;  %680 = vadd.xlane.f32.xlu2 %v679_v21 }
 0x200   :  { %v644_v30 = vsel %vm643_vm3, %v2219_v51, %v640_v40  ;;  %v652_v23 = vmul.f32 %v2221_v22, %v605_v54  ;;  %vm657_vm5 = vweird.f32 %v2221_v22  ;;  %v689_v51 = vstv %s688_s17  ;;  %v2711_v54 = vpop.permute.xlu0 %781  ;;  %s2017_s17 = sshll.u32 %s2407_s16, 4  ;;  %s2018_s17 = int_to_ptr.vmem [resolvable:$true] %s2017_s17 }
 0x201   :  { %v649_v52 = vsel %vm646_vm4, %v648_v24, %v644_v30  ;;  %vm658_vm7 = vmor %vm656_vm6, %vm657_vm5 }
 0x202   :  { %v2689_v31 = vmul.f32 %v649_v52, %v2671_v0  ;;  %v653_v32 = vsub.f32 1.0, %v652_v23 }
 0x204   :  { %v654_v35 = vmul.f32 %v2221_v22, %v653_v32  ;;  %v674_v34 = vmul.f32 %v2179_v50, %v2689_v31 }
 0x206   :  { %v655_v37 = vadd.f32 %v2221_v22, %v654_v35  ;;  %v682_v41 = vsel %vm339_vm2, %v674_v34, 0.0 }
 0x207   :  { %683 = vadd.xlane.f32.xlu0 %v682_v41 }
 0x208   :  { %v659_v44 = vsel %vm658_vm7, %v2221_v22, %v655_v37 }
 0x209   :  { %v664_v45 = vsel %vm661_vm8, %v663_v42, %v659_v44 }
 0x20a   :  { %v2694_v0 = vmul.f32 %v664_v45, %v2674_v25  ;;  %v92_v25 = vld [vmem:[%s3054_s5] sm:$0xff] }
 0x20c   :  { %v675_v47 = vmul.f32 %v2179_v50, %v2694_v0 }
 0x20e   :  { %v685_v8 = vsel %vm339_vm2, %v675_v47, 0.0 }
 0x20f   :  { %686 = vadd.xlane.f32.xlu1 %v685_v8 }
 0x217   :  { %786 = vperm.xlu2 %2176, %v94_v48  }
 0x21f   :  { %950 = vperm.xlu2 %2176, %v91_v49  }
 0x228   :  { %776 = vperm.xlu1 %2175, %v92_v25  }
 0x230   :  { %798 = vxpose.xlu0.b32.start [1/4] (short) (narrow) %v2493_v3, 8 }
 0x238   :  { %799 = vxpose.xlu0.b32.cont [2/4] (short) (narrow) %v2508_v6, 8 }
 0x240   :  { %800 = vxpose.xlu0.b32.cont [3/4] (short) (narrow) %v2530_v12, 8 }
 0x248   :  { %801 = vxpose.xlu0.b32.end [4/4] (short) (narrow) %v2545_v15, 8 }
 0x26a   :  { %v678_v50 = vpop.xlane.xlu2 %677 }
 0x26b   :  { %v690_v53 = vadd.f32 %v689_v51, %v678_v50 }
 0x26d   :  { %v2070_v59 = vmul.f32 -1.442695, %v690_v53 }
 0x272   :  { %v681_v56 = vpop.xlane.xlu2 %680 }
 0x273   :  { %v691_v29 = vadd.f32 %v689_v51, %v681_v56 }
 0x275   :  { %v2071_v1 = vmul.f32 -1.442695, %v691_v29 }
 0x277   :  { %2222 = vpow2.f32 %v2071_v1 }
 0x278   :  { %2224 = vpow2.f32 %v2070_v59 }
 0x27a   :  { %v684_v13 = vpop.xlane.xlu0 %683 }
 0x27b   :  { %v692_v20 = vadd.f32 %v689_v51, %v684_v13 }
 0x27d   :  { %v2223_v7 = vpop.eup %2222  ;;  %v2072_v40 = vmul.f32 -1.442695, %v692_v20 }
 0x27e   :  { %v2225_v21 = vpop.eup %2224  ;;  %v707_v22 = vadd.f32 1.0, %v2223_v7 }
 0x27f   :  { %2226 = vpow2.f32 %v2072_v40  ;;  %v2715_v24 = vadd.f32 1.0, %v2225_v21 }
 0x280   :  { %2228 = vrcp.f32 %v707_v22  ;;  %vm730_vm13 = vweird.f32 %v707_v22  ;;  %v734_v40 = vand.u32 2147483647, %v707_v22  ;;  %v736_v21 = vand.u32 2147483648, %v707_v22 }
 0x281   :  { %2230 = vrcp.f32 %v2715_v24  ;;  %vm715_vm3 = vweird.f32 %v2715_v24 }
 0x282   :  { %v687_v30 = vpop.xlane.xlu1 %686 }
 0x283   :  { %v693_v23 = vadd.f32 %v689_v51, %v687_v30 }
 0x285   :  { %v2227_v52 = vpop.eup %2226  ;;  %v2073_v32 = vmul.f32 -1.442695, %v693_v23 }
 0x286   :  { %v708_v19 = vadd.f32 1.0, %v2227_v52  ;;  %v2229_v35 = vpop.eup %2228 }
 0x287   :  { %2232 = vpow2.f32 %v2073_v32  ;;  %v2718_v18 = vpop.eup %2230  ;;  %v726_v37 = vmul.f32 %v2229_v35, %v707_v22  ;;  %vm731_vm10 = vweird.f32 %v2229_v35 }
 0x288   :  { %2234 = vrcp.f32 %v708_v19  ;;  %v711_v45 = vmul.f32 %v2718_v18, %v2715_v24  ;;  %v751_v56 = vand.u32 2147483648, %v708_v19  ;;  %vm745_vm11 = vweird.f32 %v708_v19  ;;  %vm2730_vm15 = vmor %vm730_vm13, %vm731_vm10 }
 0x289   :  { %v727_v8 = vsub.f32 1.0, %v726_v37  ;;  %v749_v1 = vand.u32 2147483647, %v708_v19  ;;  %vm716_vm4 = vweird.f32 %v2718_v18 }
 0x28a   :  { %v712_v49 = vsub.f32 1.0, %v711_v45  ;;  %v752_v32 = vor.u32 1.1754944e-38, %v751_v56  ;;  %v737_v45 = vor.u32 1.1754944e-38, %v736_v21  ;;  %vm717_vm10 = vmor %vm715_vm3, %vm716_vm4  ;;  %v270_v21 = vld [vmem:[#allocation2 + $0x78] sm:$0xff] }
 0x28b   :  { %v728_v25 = vmul.f32 %v2229_v35, %v727_v8  ;;  %vm750_vm6 = vcmp.eq.f32.partialorder %v749_v1, 8.507059e+37 }
 0x28c   :  { %v713_v29 = vmul.f32 %v2718_v18, %v712_v49 }
 0x28d   :  { %v2233_v34 = vpop.eup %2232  ;;  %v729_v13 = vadd.f32 %v2229_v35, %v728_v25 }
 0x28e   :  { %v2235_v41 = vpop.eup %2234  ;;  %v709_v42 = vadd.f32 1.0, %v2233_v34  ;;  %v280_v34 = vld [vmem:[#allocation2 + $0xb8] sm:$0xff] }
 0x28f   :  { %v741_v44 = vmul.f32 %v2235_v41, %v708_v19  ;;  %vm746_vm9 = vweird.f32 %v2235_v41  ;;  %v714_v19 = vadd.f32 %v2718_v18, %v713_v29  ;;  %v733_v22 = vsel %vm2730_vm15, %v2229_v35, %v729_v13  ;;  %v2750_v29 = vpop.permute.xlu2 %786  ;;  %v275_v13 = vld [vmem:[#allocation2 + $0x98] sm:$0xff] }
 0x290   :  { %2236 = vrcp.f32 %v709_v42  ;;  %v766_v20 = vand.u32 2147483648, %v709_v42  ;;  %vm2723_vm12 = vmor %vm745_vm11, %vm746_vm9  ;;  %v764_v23 = vand.u32 2147483647, %v709_v42  ;;  %vm760_vm5 = vweird.f32 %v709_v42 }
 0x291   :  { %v742_v47 = vsub.f32 1.0, %v741_v44  ;;  %vm735_vm9 = vcmp.eq.f32.partialorder %v734_v40, 8.507059e+37  ;;  %v272_v40 = vld [vmem:[#allocation2 + $0x80] sm:$0xff] }
 0x292   :  { %vm765_vm8 = vcmp.eq.f32.partialorder %v764_v23, 8.507059e+37  ;;  %v738_v25 = vsel %vm735_vm9, %v737_v45, %v733_v22  ;;  %v267_v23 = vld [vmem:[#allocation2 + $0x60] sm:$0xff] }
 0x293   :  { %v743_v48 = vmul.f32 %v2235_v41, %v742_v47  ;;  %v721_v47 = vand.u32 2147483648, %v2715_v24  ;;  %v771_v56 = vmul.f32 %v738_v25, %v2684_v36  ;;  %v274_v36 = vld [vmem:[#allocation2 + $0x90] sm:$0xff]  ;;  %v277_v45 = vld [vmem:[#allocation2 + $0xa0] sm:$0xff] }
 0x295   :  { %v744_v53 = vadd.f32 %v2235_v41, %v743_v48  ;;  %v719_v48 = vand.u32 2147483647, %v2715_v24 }
 0x296   :  { %v2237_v50 = vpop.eup %2236 }
 0x297   :  { %v756_v51 = vmul.f32 %v2237_v50, %v709_v42  ;;  %vm761_vm14 = vweird.f32 %v2237_v50  ;;  %v748_v52 = vsel %vm2723_vm12, %v2235_v41, %v744_v53  ;;  %v767_v41 = vor.u32 1.1754944e-38, %v766_v20  ;;  %v273_v20 = vld [vmem:[#allocation2 + $0x88] sm:$0xff] }
 0x298   :  { %vm762_vm7 = vmor %vm760_vm5, %vm761_vm14  ;;  %v753_v44 = vsel %vm750_vm6, %v752_v32, %v748_v52  ;;  %v722_v53 = vor.u32 1.1754944e-38, %v721_v47  ;;  %vm720_vm11 = vcmp.eq.f32.partialorder %v719_v48, 8.507059e+37 }
 0x299   :  { %v757_v59 = vsub.f32 1.0, %v756_v51  ;;  %v772_v42 = vmul.f32 %v753_v44, %v2689_v31  ;;  %v718_v51 = vsel %vm717_vm10, %v2718_v18, %v714_v19  ;;  %v279_v19 = vld [vmem:[#allocation2 + $0xb0] sm:$0xff] }
 0x29a   :  { %v2753_v24 = vpop.permute.xlu1 %776 }
 0x29b   :  { %v758_v30 = vmul.f32 %v2237_v50, %v757_v59  ;;  %v723_v59 = vsel %vm720_vm11, %v722_v53, %v718_v51  ;;  %v796_v1 = vmul.f32 %v2750_v29, %v772_v42 }
 0x29c   :  { %v770_v31 = vmul.f32 %v723_v59, %v2680_v38  ;;  %v268_v38 = vld [vmem:[#allocation2 + $0x68] sm:$0xff] }
 0x29d   :  { %v759_v37 = vadd.f32 %v2237_v50, %v758_v30  ;;  %v269_v30 = vld [vmem:[#allocation2 + $0x70] sm:$0xff] }
 0x29e   :  { %v794_v18 = vmul.f32 %v2753_v24, %v770_v31  ;;  %v2181_v31 = vld [vmem:[%s3059_s10 + $0x3] ss:$0 sm:$0xff] }
 0x29f   :  { %v763_v8 = vsel %vm762_vm7, %v2237_v50, %v759_v37  ;;  %v2180_v37 = vld [vmem:[%s3059_s10 + $0x2] ss:$0 sm:$0xff] }
 0x2a0   :  { %v768_v49 = vsel %vm765_vm8, %v767_v41, %v763_v8  ;;  %v278_v41 = vld [vmem:[#allocation2 + $0xa8] sm:$0xff] }
 0x2a1   :  { %v773_v35 = vmul.f32 %v768_v49, %v2694_v0  ;;  %v795_v0 = vmul.f32 %v2711_v54, %v771_v56 }
 0x2a3   :  { %v797_v50 = vmul.f32 %v2713_v2, %v773_v35 }
 0x2a5   :  { %845 = vmatpush.msrb.mxu3 %v797_v50 }
 0x2a7   :  { %846 = vmatpush.msrb.mxu3 %v796_v1 }
 0x2a9   :  { %847 = vmatpush.msrb.mxu3 %v795_v0 }
 0x2ab   :  { %848 = vmatpush.msrb.mxu3 %v794_v18 }
 0x2ad   :  { %868 = vmatpush.msra.mxu3 %v275_v13  ;;  %v963_v13 = vld [vmem:[#allocation2 + $0xf8] sm:$0xff] }
 0x2ae   :  { %1066 = vmatpush.msra.mxu2 %v963_v13  ;;  %v965_v13 = vld [vmem:[#allocation2 + $0x100] sm:$0xff] }
 0x2af   :  { %869 = vmatpush.msra.mxu3 %v274_v36  ;;  %v958_v36 = vld [vmem:[#allocation2 + $0xd8] sm:$0xff] }
 0x2b1   :  { %870 = vmatpush.msra.mxu3 %v273_v20  ;;  %v962_v20 = vld [vmem:[#allocation2 + $0xf0] sm:$0xff] }
 0x2b2   :  { %1067 = vmatpush.msra.mxu2 %v962_v20 }
 0x2b3   :  { %871 = vmatpush.msra.mxu3 %v272_v40 }
 0x2d4   :  { %v2758_v7 = vpop.trf.xlu0 }
 0x2d5   :  { %2074 = vmatmul.msk.f32.vlgmr.msrb.gmra.mxu3 %vm339_vm2, %v2758_v7 }
 0x2d6   :  { %891 = vmatpush.msrb.mxu3 %v270_v21  ;;  %v957_v21 = vld [vmem:[#allocation2 + $0xd0] sm:$0xff] }
 0x2d8   :  { %892 = vmatpush.msrb.mxu3 %v269_v30  ;;  %v961_v30 = vld [vmem:[#allocation2 + $0xe8] sm:$0xff] }
 0x2d9   :  { %1068 = vmatpush.msra.mxu2 %v961_v30 }
 0x2da   :  { %893 = vmatpush.msrb.mxu3 %v268_v38  ;;  %v956_v38 = vld [vmem:[#allocation2 + $0xc8] sm:$0xff] }
 0x2dc   :  { %894 = vmatpush.msrb.mxu3 %v267_v23  ;;  %v2334_v23 = vld [vmem:[%s3049_s0] sm:$0xff] }
 0x358   :  { %v850_v52 = vpop.f32.mrf.mxu3 }
 0x359   :  { %2075 = vmatmul.msk.f32.vlgmr.msra.gmra.mxu3 %vm339_vm2, %v850_v52 }
 0x35a   :  { %939 = vmatpush.msra.mxu3 %v280_v34 }
 0x35c   :  { %940 = vmatpush.msra.mxu3 %v279_v19  ;;  %v960_v19 = vld [vmem:[#allocation2 + $0xe0] sm:$0xff] }
 0x35d   :  { %1069 = vmatpush.msra.mxu2 %v960_v19 }
 0x35e   :  { %941 = vmatpush.msra.mxu3 %v278_v41  ;;  %v972_v41 = vld [vmem:[#allocation2 + $0x130] sm:$0xff] }
 0x360   :  { %942 = vmatpush.msra.mxu3 %v277_v45  ;;  %v970_v45 = vld [vmem:[#allocation2 + $0x120] sm:$0xff] }
 0x361   :  { %2076 = vmatmul.msk.f32.vlgmr.msrb.gmra.mxu3 %vm339_vm2, %v2500_v5 }
 0x362   :  { %1107 = vmatpush.msrb.mxu3 %v958_v36  ;;  %v1133_v36 = vmul.f32 %v2613_v62, %v2630_v17 }
 0x364   :  { %1108 = vmatpush.msrb.mxu3 %v957_v21 }
 0x366   :  { %1109 = vmatpush.msrb.mxu3 %v956_v38 }
 0x3dc   :  { %v873_v32 = vpop.f32.mrf.mxu3 }
 0x3e4   :  { %v896_v22 = vpop.f32.mrf.mxu3 }
 0x3e5   :  { %v897_v44 = vadd.f32 %v896_v22, %v873_v32  ;;  %v2775_v32 = vpop.permute.xlu2 %950  ;;  %v973_v22 = vld [vmem:[#allocation2 + $0x138] sm:$0xff] }
 0x3e7   :  { %v901_v47 = vadd.f32 %v2180_v37, %v897_v44  ;;  %v955_v37 = vld [vmem:[#allocation2 + $0xc0] sm:$0xff]  ;;  %v971_v44 = vld [vmem:[#allocation2 + $0x128] sm:$0xff] }
 0x3e8   :  { %1110 = vmatpush.msrb.mxu3 %v955_v37 }
 0x3e9   :  { %v2077_v8 = vmul.f32 -1.442695, %v901_v47 }
 0x3eb   :  { %2238 = vpow2.f32 %v2077_v8 }
 0x3f1   :  { %v2239_v48 = vpop.eup %2238 }
 0x3f2   :  { %v905_v5 = vadd.f32 1.0, %v2239_v48 }
 0x3f4   :  { %2240 = vrcp.f32 %v905_v5  ;;  %v917_v42 = vand.u32 2147483648, %v905_v5  ;;  %v915_v53 = vand.u32 2147483647, %v905_v5  ;;  %vm911_vm13 = vweird.f32 %v905_v5 }
 0x3f6   :  { %v918_v56 = vor.u32 1.1754944e-38, %v917_v42  ;;  %vm916_vm15 = vcmp.eq.f32.partialorder %v915_v53, 8.507059e+37  ;;  %v967_v53 = vld [vmem:[#allocation2 + $0x110] sm:$0xff] }
 0x3fa   :  { %v2241_v49 = vpop.eup %2240 }
 0x3fb   :  { %v907_v25 = vmul.f32 %v2241_v49, %v905_v5  ;;  %vm912_vm12 = vweird.f32 %v2241_v49 }
 0x3fc   :  { %vm913_vm14 = vmor %vm911_vm13, %vm912_vm12 }
 0x3fd   :  { %v908_v35 = vsub.f32 1.0, %v907_v25 }
 0x3ff   :  { %v909_v51 = vmul.f32 %v2241_v49, %v908_v35 }
 0x401   :  { %v910_v50 = vadd.f32 %v2241_v49, %v909_v51  ;;  %v968_v51 = vld [vmem:[#allocation2 + $0x118] sm:$0xff] }
 0x403   :  { %v914_v59 = vsel %vm913_vm14, %v2241_v49, %v910_v50  ;;  %v2182_v50 = vld [vmem:[%s3059_s10 + $0x4] ss:$0 sm:$0xff] }
 0x404   :  { %v919_v1 = vsel %vm916_vm15, %v918_v56, %v914_v59 }
 0x405   :  { %v921_v0 = vmul.f32 %v919_v1, %v901_v47  ;;  %v966_v1 = vld [vmem:[#allocation2 + $0x108] sm:$0xff] }
 0x407   :  { %2078 = vmatmul.msk.f32.vlgmr.msra.gmra.mxu3 %vm339_vm2, %v921_v0  ;;  %v1128_v0 = vmul.f32 %v2609_v60, %v2635_v28 }
 0x408   :  { %1519 = vmatpush.msra.mxu3 %v973_v22 }
 0x409   :  { %v1137_v21 = vadd.f32 %v1133_v36, %v1128_v0 }
 0x40a   :  { %1520 = vmatpush.msra.mxu3 %v972_v41 }
 0x40b   :  { %v1143_v19 = vadd.f32 %v2182_v50, %v1137_v21 }
 0x40c   :  { %1521 = vmatpush.msra.mxu3 %v971_v44 }
 0x40e   :  { %1522 = vmatpush.msra.mxu3 %v970_v45 }
 0x48a   :  { %v944_v18 = vpop.f32.mrf.mxu3 }
 0x48b   :  { %v945_v40 = vadd.f32 %v2181_v31, %v944_v18  ;;  %v1142_v18 = vadd.f32 %v2182_v50, %v2623_v9  ;;  %v1134_v9 = vmul.f32 %v2613_v62, %v2633_v26 }
 0x48d   :  { %v947_v52 = vadd.f32 %v2334_v23, %v945_v40  ;;  %v1129_v23 = vmul.f32 %v2609_v60, %v2642_v43 }
 0x48f   :  { %v2778_v34 = vmul.f32 %v2775_v32, %v947_v52  ;;  %v1138_v44 = vadd.f32 %v1134_v9, %v1129_v23 }
 0x491   :  { %999 = vmatpush.msra.mxu0 %v2778_v34  ;;  %1028 = vmatpush.msrb.mxu1 %v2778_v34 }
 0x492   :  { %2079 = vmatmul.msk.f32.vlgmr.msra.gmra.mxu0 %vm100_vm0, %v2493_v3  ;;  %2083 = vmatmul.msk.f32.vlgmr.msrb.gmra.mxu1 %vm100_vm0, %v2495_v4 }
 0x493   :  { %1256 = vmatpush.msrb.mxu0 %v968_v51 }
 0x495   :  { %1257 = vmatpush.msrb.mxu0 %v967_v53 }
 0x497   :  { %1258 = vmatpush.msrb.mxu0 %v966_v1 }
 0x499   :  { %1259 = vmatpush.msrb.mxu0 %v965_v13 }
 0x49a   :  { %2080 = vmatmul.msk.f32.gmra.mxu0 %vm100_vm0, %v2508_v6  ;;  %2084 = vmatmul.msk.f32.gmra.mxu1 %vm100_vm0, %v2521_v10 }
 0x4a2   :  { %2081 = vmatmul.msk.f32.gmra.mxu0 %vm100_vm0, %v2530_v12  ;;  %2085 = vmatmul.msk.f32.gmra.mxu1 %vm100_vm0, %v2539_v14 }
 0x4aa   :  { %2082 = vmatmul.msk.f32.gmra.mxu0 %vm100_vm0, %v2545_v15  ;;  %2086 = vmatmul.msk.f32.gmra.mxu1 %vm100_vm0, %v2551_v16 }
 0x50f   :  { %v1001_v47 = vpop.f32.mrf.mxu0  ;;  %v1030_v8 = vpop.f32.mrf.mxu1 }
 0x510   :  { %2087 = vmatmul.msk.f32.vlgmr.msra.gmra.mxu2 %vm339_vm2, %v1030_v8  ;;  %2091 = vmatmul.msk.f32.vlgmr.msrb.gmra.mxu3 %vm339_vm2, %v1001_v47 }
 0x517   :  { %v1004_v48 = vpop.f32.mrf.mxu0  ;;  %v1033_v5 = vpop.f32.mrf.mxu1 }
 0x518   :  { %2088 = vmatmul.msk.f32.gmra.mxu2 %vm339_vm2, %v1033_v5  ;;  %2092 = vmatmul.msk.f32.gmra.mxu3 %vm339_vm2, %v1004_v48  ;;  %v1135_v48 = vmul.f32 %v2613_v62, %v2649_v55 }
 0x51f   :  { %v1007_v49 = vpop.f32.mrf.mxu0  ;;  %v1036_v25 = vpop.f32.mrf.mxu1 }
 0x520   :  { %2089 = vmatmul.msk.f32.gmra.mxu2 %vm339_vm2, %v1036_v25  ;;  %2093 = vmatmul.msk.f32.gmra.mxu3 %vm339_vm2, %v1007_v49  ;;  %v1144_v49 = vadd.f32 %v2182_v50, %v1138_v44  ;;  %v1130_v25 = vmul.f32 %v2609_v60, %v2651_v58 }
 0x522   :  { %v1139_v51 = vadd.f32 %v1135_v48, %v1130_v25 }
 0x524   :  { %v1145_v13 = vadd.f32 %v2182_v50, %v1139_v51 }
 0x527   :  { %v1010_v35 = vpop.f32.mrf.mxu0  ;;  %v1039_v42 = vpop.f32.mrf.mxu1 }
 0x528   :  { %2090 = vmatmul.msk.f32.gmra.mxu2 %vm339_vm2, %v1039_v42  ;;  %2094 = vmatmul.msk.f32.gmra.mxu3 %vm339_vm2, %v1010_v35 }
 0x530   :  { %2115 = vmatmul.msk.f32.vlgmr.msra.gmra.mxu3 %vm339_vm2, %v2778_v34 }
 0x593   :  { %v1071_v56 = vpop.f32.mrf.mxu2  ;;  %v1112_v59 = vpop.f32.mrf.mxu3 }
 0x594   :  { %v1113_v31 = vadd.f32 %v1112_v59, %v1071_v56 }
 0x596   :  { %v1146_v20 = vadd.f32 %v1142_v18, %v1113_v31 }
 0x598   :  { %v2096_v40 = vmul.f32 -1.442695, %v1146_v20 }
 0x59a   :  { %2242 = vpow2.f32 %v2096_v40 }
 0x59b   :  { %v1074_v30 = vpop.f32.mrf.mxu2  ;;  %v1115_v38 = vpop.f32.mrf.mxu3 }
 0x59c   :  { %v1116_v52 = vadd.f32 %v1115_v38, %v1074_v30 }
 0x59e   :  { %v2820_v37 = vadd.f32 %v1143_v19, %v1116_v52 }
 0x5a0   :  { %v2243_v22 = vpop.eup %2242  ;;  %v2097_v41 = vmul.f32 -1.442695, %v2820_v37 }
 0x5a1   :  { %v1162_v45 = vadd.f32 1.0, %v2243_v22 }
 0x5a2   :  { %2244 = vpow2.f32 %v2097_v41 }
 0x5a3   :  { %2246 = vrcp.f32 %v1162_v45  ;;  %v1077_v47 = vpop.f32.mrf.mxu2  ;;  %v1118_v8 = vpop.f32.mrf.mxu3  ;;  %v1177_v36 = vand.u32 2147483648, %v1162_v45  ;;  %v1175_v60 = vand.u32 2147483647, %v1162_v45  ;;  %vm1171_vm4 = vweird.f32 %v1162_v45 }
 0x5a4   :  { %v1119_v5 = vadd.f32 %v1118_v8, %v1077_v47 }
 0x5a5   :  { %v1178_v19 = vor.u32 1.1754944e-38, %v1177_v36  ;;  %vm1176_vm6 = vcmp.eq.f32.partialorder %v1175_v60, 8.507059e+37 }
 0x5a6   :  { %v2827_v35 = vadd.f32 %v1144_v49, %v1119_v5 }
 0x5a8   :  { %v2245_v42 = vpop.eup %2244  ;;  %v2098_v53 = vmul.f32 -1.442695, %v2827_v35 }
 0x5a9   :  { %v2247_v56 = vpop.eup %2246  ;;  %v1163_v59 = vadd.f32 1.0, %v2245_v42 }
 0x5aa   :  { %v1167_v1 = vmul.f32 %v2247_v56, %v1162_v45  ;;  %2248 = vpow2.f32 %v2098_v53  ;;  %vm1172_vm3 = vweird.f32 %v2247_v56 }
 0x5ab   :  { %2250 = vrcp.f32 %v1163_v59  ;;  %v1080_v0 = vpop.f32.mrf.mxu2  ;;  %v1121_v31 = vpop.f32.mrf.mxu3  ;;  %vm1173_vm5 = vmor %vm1171_vm4, %vm1172_vm3  ;;  %v1192_v8 = vand.u32 2147483648, %v1163_v59  ;;  %v1190_v45 = vand.u32 2147483647, %v1163_v59  ;;  %vm1186_vm8 = vweird.f32 %v1163_v59 }
 0x5ac   :  { %v1168_v18 = vsub.f32 1.0, %v1167_v1  ;;  %v1122_v62 = vadd.f32 %v1121_v31, %v1080_v0 }
 0x5ad   :  { %v1193_v51 = vor.u32 1.1754944e-38, %v1192_v8  ;;  %vm1191_vm10 = vcmp.eq.f32.partialorder %v1190_v45, 8.507059e+37 }
 0x5ae   :  { %v1169_v40 = vmul.f32 %v2247_v56, %v1168_v18  ;;  %v2830_v21 = vadd.f32 %v1145_v13, %v1122_v62 }
 0x5b0   :  { %v2249_v30 = vpop.eup %2248  ;;  %v1170_v38 = vadd.f32 %v2247_v56, %v1169_v40  ;;  %v2099_v23 = vmul.f32 -1.442695, %v2830_v21 }
 0x5b1   :  { %v2251_v52 = vpop.eup %2250  ;;  %v1164_v9 = vadd.f32 1.0, %v2249_v30 }
 0x5b2   :  { %v1174_v22 = vsel %vm1173_vm5, %v2247_v56, %v1170_v38  ;;  %2252 = vpow2.f32 %v2099_v23  ;;  %v1182_v41 = vmul.f32 %v2251_v52, %v1163_v59  ;;  %vm1187_vm7 = vweird.f32 %v2251_v52 }
 0x5b3   :  { %v1179_v50 = vsel %vm1176_vm6, %v1178_v19, %v1174_v22  ;;  %2254 = vrcp.f32 %v1164_v9  ;;  %vm1188_vm9 = vmor %vm1186_vm8, %vm1187_vm7  ;;  %v1207_v31 = vand.u32 2147483648, %v1164_v9  ;;  %v1205_v62 = vand.u32 2147483647, %v1164_v9 }
 0x5b4   :  { %v1226_v44 = vmul.f32 %v1179_v50, %v1146_v20  ;;  %v1183_v47 = vsub.f32 1.0, %v1182_v41  ;;  %vm1201_vm12 = vweird.f32 %v1164_v9 }
 0x5b5   :  { %v1208_v36 = vor.u32 1.1754944e-38, %v1207_v31  ;;  %vm1206_vm14 = vcmp.eq.f32.partialorder %v1205_v62, 8.507059e+37 }
 0x5b6   :  { %2100 = vmatmul.msk.f32.vlgmr.msrb.gmra.mxu0 %vm339_vm2, %v1226_v44  ;;  %v1184_v48 = vmul.f32 %v2251_v52, %v1183_v47 }
 0x5b8   :  { %v2253_v5 = vpop.eup %2252  ;;  %v1185_v49 = vadd.f32 %v2251_v52, %v1184_v48 }
 0x5b9   :  { %v2255_v25 = vpop.eup %2254  ;;  %v1165_v42 = vadd.f32 1.0, %v2253_v5 }
 0x5ba   :  { %v1189_v53 = vsel %vm1188_vm9, %v2251_v52, %v1185_v49  ;;  %v1197_v56 = vmul.f32 %v2255_v25, %v1164_v9  ;;  %vm1202_vm11 = vweird.f32 %v2255_v25 }
 0x5bb   :  { %2256 = vrcp.f32 %v1165_v42  ;;  %v1194_v1 = vsel %vm1191_vm10, %v1193_v51, %v1189_v53  ;;  %vm1203_vm13 = vmor %vm1201_vm12, %vm1202_vm11  ;;  %v1220_v19 = vand.u32 2147483647, %v1165_v42  ;;  %vm1216_vm3 = vweird.f32 %v1165_v42 }
 0x5bc   :  { %v1227_v20 = vmul.f32 %v1194_v1, %v2820_v37  ;;  %v1198_v0 = vsub.f32 1.0, %v1197_v56  ;;  %v1222_v37 = vand.u32 2147483648, %v1165_v42 }
 0x5bd   :  { %vm1221_vm5 = vcmp.eq.f32.partialorder %v1220_v19, 8.507059e+37 }
 0x5be   :  { %2101 = vmatmul.msk.f32.gmra.mxu0 %vm339_vm2, %v1227_v20  ;;  %v1199_v18 = vmul.f32 %v2255_v25, %v1198_v0  ;;  %v1223_v9 = vor.u32 1.1754944e-38, %v1222_v37 }
 0x5c0   :  { %v1200_v13 = vadd.f32 %v2255_v25, %v1199_v18 }
 0x5c1   :  { %v2257_v59 = vpop.eup %2256 }
 0x5c2   :  { %v1204_v40 = vsel %vm1203_vm13, %v2255_v25, %v1200_v13  ;;  %v1212_v60 = vmul.f32 %v2257_v59, %v1165_v42  ;;  %vm1217_vm15 = vweird.f32 %v2257_v59 }
 0x5c3   :  { %v1209_v30 = vsel %vm1206_vm14, %v1208_v36, %v1204_v40  ;;  %vm1218_vm4 = vmor %vm1216_vm3, %vm1217_vm15 }
 0x5c4   :  { %v1228_v38 = vmul.f32 %v1209_v30, %v2827_v35  ;;  %v1213_v23 = vsub.f32 1.0, %v1212_v60  ;;  %v2183_v35 = vld [vmem:[%s3059_s10 + $0x5] ss:$0 sm:$0xff] }
 0x5c6   :  { %2102 = vmatmul.msk.f32.gmra.mxu0 %vm339_vm2, %v1228_v38  ;;  %v1214_v52 = vmul.f32 %v2257_v59, %v1213_v23 }
 0x5c8   :  { %v1215_v22 = vadd.f32 %v2257_v59, %v1214_v52 }
 0x5ca   :  { %v1219_v41 = vsel %vm1218_vm4, %v2257_v59, %v1215_v22 }
 0x5cb   :  { %v1224_v50 = vsel %vm1221_vm5, %v1223_v9, %v1219_v41 }
 0x5cc   :  { %v1229_v44 = vmul.f32 %v1224_v50, %v2830_v21 }
 0x5ce   :  { %2103 = vmatmul.msk.f32.gmra.mxu0 %vm339_vm2, %v1229_v44 }
 0x633   :  { %v1261_v47 = vpop.f32.mrf.mxu0 }
 0x634   :  { %v2843_v8 = vadd.f32 %v2183_v35, %v1261_v47 }
 0x636   :  { %v2104_v48 = vmul.f32 -1.442695, %v2843_v8 }
 0x638   :  { %2258 = vpow2.f32 %v2104_v48 }
 0x63b   :  { %v1264_v45 = vpop.f32.mrf.mxu0 }
 0x63c   :  { %v2846_v5 = vadd.f32 %v2183_v35, %v1264_v45 }
 0x63e   :  { %v2105_v49 = vmul.f32 -1.442695, %v2846_v5  ;;  %v2259_v25 = vpop.eup %2258 }
 0x63f   :  { %v1285_v21 = vadd.f32 1.0, %v2259_v25 }
 0x640   :  { %2260 = vpow2.f32 %v2105_v49 }
 0x641   :  { %2262 = vrcp.f32 %v1285_v21  ;;  %vm1294_vm8 = vweird.f32 %v1285_v21  ;;  %v1298_v48 = vand.u32 2147483647, %v1285_v21 }
 0x643   :  { %v1267_v42 = vpop.f32.mrf.mxu0  ;;  %vm1299_vm13 = vcmp.eq.f32.partialorder %v1298_v48, 8.507059e+37 }
 0x644   :  { %v1268_v51 = vadd.f32 %v2183_v35, %v1267_v42 }
 0x646   :  { %v2106_v53 = vmul.f32 -1.442695, %v1268_v51  ;;  %v2261_v56 = vpop.eup %2260 }
 0x647   :  { %v2849_v1 = vadd.f32 1.0, %v2261_v56  ;;  %v2263_v31 = vpop.eup %2262 }
 0x648   :  { %2264 = vpow2.f32 %v2106_v53  ;;  %v1290_v59 = vmul.f32 %v2263_v31, %v1285_v21  ;;  %vm1295_vm6 = vweird.f32 %v2263_v31 }
 0x649   :  { %2266 = vrcp.f32 %v2849_v1  ;;  %vm2859_vm9 = vmor %vm1294_vm8, %vm1295_vm6  ;;  %vm1309_vm3 = vweird.f32 %v2849_v1 }
 0x64a   :  { %v1291_v40 = vsub.f32 1.0, %v1290_v59 }
 0x64b   :  { %v1270_v20 = vpop.f32.mrf.mxu0 }
 0x64c   :  { %v2851_v0 = vadd.f32 %v2183_v35, %v1270_v20  ;;  %v1292_v37 = vmul.f32 %v2263_v31, %v1291_v40  ;;  %v1300_v35 = vand.u32 2147483648, %v1285_v21  ;;  %v2184_v21 = vld [vmem:[%s3058_s9 + $0x1] ss:$0 sm:$0xff] }
 0x64e   :  { %v2265_v18 = vpop.eup %2264  ;;  %v2107_v62 = vmul.f32 -1.442695, %v2851_v0  ;;  %v1293_v41 = vadd.f32 %v2263_v31, %v1292_v37 }
 0x64f   :  { %v1287_v13 = vadd.f32 1.0, %v2265_v18  ;;  %v2855_v36 = vpop.eup %2266  ;;  %v1301_v18 = vor.u32 1.1754944e-38, %v1300_v35 }
 0x650   :  { %2268 = vpow2.f32 %v2107_v62  ;;  %v1305_v38 = vmul.f32 %v2855_v36, %v2849_v1  ;;  %v1297_v53 = vsel %vm2859_vm9, %v2263_v31, %v1293_v41  ;;  %vm1310_vm14 = vweird.f32 %v2855_v36 }
 0x651   :  { %2270 = vrcp.f32 %v1287_v13  ;;  %v1330_v9 = vand.u32 2147483648, %v1287_v13  ;;  %v1328_v44 = vand.u32 2147483647, %v1287_v13  ;;  %vm1324_vm10 = vweird.f32 %v1287_v13  ;;  %vm2880_vm4 = vmor %vm1309_vm3, %vm1310_vm14 }
 0x652   :  { %v1306_v22 = vsub.f32 1.0, %v1305_v38 }
 0x653   :  { %v1331_v42 = vor.u32 1.1754944e-38, %v1330_v9  ;;  %vm1329_vm12 = vcmp.eq.f32.partialorder %v1328_v44, 8.507059e+37 }
 0x654   :  { %v1307_v25 = vmul.f32 %v2855_v36, %v1306_v22 }
 0x656   :  { %v2269_v60 = vpop.eup %2268 }
 0x657   :  { %v2271_v30 = vpop.eup %2270  ;;  %v1288_v23 = vadd.f32 1.0, %v2269_v60  ;;  %v1308_v60 = vadd.f32 %v2855_v36, %v1307_v25 }
 0x658   :  { %v1320_v52 = vmul.f32 %v2271_v30, %v1287_v13  ;;  %vm1325_vm7 = vweird.f32 %v2271_v30  ;;  %v1302_v13 = vsel %vm1299_vm13, %v1301_v18, %v1297_v53 }
 0x659   :  { %2272 = vrcp.f32 %v1288_v23  ;;  %vm1326_vm11 = vmor %vm1324_vm10, %vm1325_vm7  ;;  %v1345_v38 = vand.u32 2147483648, %v1288_v23  ;;  %vm1339_vm5 = vweird.f32 %v1288_v23  ;;  %v1312_v44 = vsel %vm2880_vm4, %v2855_v36, %v1308_v60 }
 0x65a   :  { %v1321_v19 = vsub.f32 1.0, %v1320_v52  ;;  %v1315_v52 = vand.u32 2147483648, %v2849_v1 }
 0x65c   :  { %v1322_v50 = vmul.f32 %v2271_v30, %v1321_v19  ;;  %v2878_v19 = vmul.f32 %v1302_v13, %v2843_v8 }
 0x65e   :  { %v1323_v45 = vadd.f32 %v2271_v30, %v1322_v50  ;;  %v1346_v50 = vor.u32 1.1754944e-38, %v1345_v38  ;;  %v1355_v48 = vmul.f32 %v2184_v21, %v2878_v19 }
 0x65f   :  { %v2273_v49 = vpop.eup %2272 }
 0x660   :  { %v1327_v56 = vsel %vm1326_vm11, %v2271_v30, %v1323_v45  ;;  %v1335_v20 = vmul.f32 %v2273_v49, %v1288_v23  ;;  %vm1340_vm15 = vweird.f32 %v2273_v49  ;;  %v1343_v30 = vand.u32 2147483647, %v1288_v23 }
 0x661   :  { %v1332_v62 = vsel %vm1329_vm12, %v1331_v42, %v1327_v56  ;;  %vm1341_vm6 = vmor %vm1339_vm5, %vm1340_vm15  ;;  %v1359_v42 = vsel %vm339_vm2, %v1355_v48, 0.0  ;;  %v976_v48 = vld [vmem:[#allocation2 + $0x148] sm:$0xff] }
 0x662   :  { %v2866_v59 = vmul.f32 %v1332_v62, %v1268_v51  ;;  %v1336_v40 = vsub.f32 1.0, %v1335_v20  ;;  %v1313_v51 = vand.u32 2147483647, %v2849_v1  ;;  %vm1344_vm7 = vcmp.eq.f32.partialorder %v1343_v30, 8.507059e+37 }
 0x663   :  { %v1316_v1 = vor.u32 1.1754944e-38, %v1315_v52 }
 0x664   :  { %v1337_v31 = vmul.f32 %v2273_v49, %v1336_v40  ;;  %v1357_v37 = vmul.f32 %v2184_v21, %v2866_v59  ;;  %vm1314_vm8 = vcmp.eq.f32.partialorder %v1313_v51, 8.507059e+37 }
 0x665   :  { %v1317_v23 = vsel %vm1314_vm8, %v1316_v1, %v1312_v44  ;;  %v977_v1 = vld [vmem:[#allocation2 + $0x150] sm:$0xff] }
 0x666   :  { %v1338_v9 = vadd.f32 %v2273_v49, %v1337_v31  ;;  %v1365_v41 = vsel %vm339_vm2, %v1357_v37, 0.0  ;;  %v2894_v25 = vmul.f32 %v1317_v23, %v2846_v5 }
 0x667   :  { %1366 = vadd.xlane.f32.xlu2 %v1365_v41 }
 0x668   :  { %v1342_v35 = vsel %vm1341_vm6, %v2273_v49, %v1338_v9  ;;  %v1356_v49 = vmul.f32 %v2184_v21, %v2894_v25 }
 0x669   :  { %v1347_v8 = vsel %vm1344_vm7, %v1346_v50, %v1342_v35  ;;  %v978_v35 = vld [vmem:[#allocation2 + $0x158] sm:$0xff] }
 0x66a   :  { %v2889_v47 = vmul.f32 %v1347_v8, %v2851_v0  ;;  %v1362_v53 = vsel %vm339_vm2, %v1356_v49, 0.0  ;;  %v1372_v0 = vstv %s2108_s24  ;;  %1496 = vmatpush.msrb.mxu2 %v978_v35 }
 0x66c   :  { %v1358_v45 = vmul.f32 %v2184_v21, %v2889_v47  ;;  %1497 = vmatpush.msrb.mxu2 %v977_v1 }
 0x66e   :  { %v1368_v36 = vsel %vm339_vm2, %v1358_v45, 0.0  ;;  %1498 = vmatpush.msrb.mxu2 %v976_v48 }
 0x66f   :  { %1360 = vadd.xlane.f32.xlu2 %v1359_v42  ;;  %1369 = vadd.xlane.f32.xlu1 %v1368_v36 }
 0x677   :  { %1363 = vadd.xlane.f32.xlu1 %v1362_v53 }
 0x6da   :  { %v1367_v56 = vpop.xlane.xlu2 %1366 }
 0x6db   :  { %v1375_v20 = vadd.f32 %v1372_v0, %v1367_v56 }
 0x6dd   :  { %v2111_v18 = vmul.f32 -1.442695, %v1375_v20 }
 0x6df   :  { %2274 = vpow2.f32 %v2111_v18 }
 0x6e2   :  { %v1361_v62 = vpop.xlane.xlu2 %1360  ;;  %v1370_v5 = vpop.xlane.xlu1 %1369 }
 0x6e3   :  { %v1373_v40 = vadd.f32 %v1372_v0, %v1361_v62  ;;  %v1376_v13 = vadd.f32 %v1372_v0, %v1370_v5 }
 0x6e5   :  { %v2275_v60 = vpop.eup %2274  ;;  %v2109_v38 = vmul.f32 -1.442695, %v1373_v40  ;;  %v2112_v31 = vmul.f32 -1.442695, %v1376_v13 }
 0x6e6   :  { %v1391_v30 = vadd.f32 1.0, %v2275_v60 }
 0x6e7   :  { %2276 = vpow2.f32 %v2109_v38 }
 0x6e8   :  { %2278 = vrcp.f32 %v1391_v30  ;;  %v1434_v18 = vand.u32 2147483648, %v1391_v30  ;;  %vm1428_vm10 = vweird.f32 %v1391_v30  ;;  %v1432_v62 = vand.u32 2147483647, %v1391_v30 }
 0x6e9   :  { %2280 = vpow2.f32 %v2112_v31 }
 0x6ea   :  { %v1364_v21 = vpop.xlane.xlu1 %1363  ;;  %vm1433_vm14 = vcmp.eq.f32.partialorder %v1432_v62, 8.507059e+37 }
 0x6eb   :  { %v1374_v37 = vadd.f32 %v1372_v0, %v1364_v21  ;;  %v1435_v21 = vor.u32 1.1754944e-38, %v1434_v18 }
 0x6ed   :  { %v2277_v51 = vpop.eup %2276  ;;  %v2110_v52 = vmul.f32 -1.442695, %v1374_v37 }
 0x6ee   :  { %v2279_v22 = vpop.eup %2278  ;;  %v2900_v9 = vadd.f32 1.0, %v2277_v51 }
 0x6ef   :  { %v2281_v41 = vpop.eup %2280  ;;  %v1424_v50 = vmul.f32 %v2279_v22, %v1391_v30  ;;  %2282 = vpow2.f32 %v2110_v52  ;;  %vm1429_vm9 = vweird.f32 %v2279_v22 }
 0x6f0   :  { %2284 = vrcp.f32 %v2900_v9  ;;  %v1392_v44 = vadd.f32 1.0, %v2281_v41  ;;  %vm1430_vm11 = vmor %vm1428_vm10, %vm1429_vm9  ;;  %vm1398_vm4 = vweird.f32 %v2900_v9  ;;  %v1404_v30 = vand.u32 2147483648, %v2900_v9 }
 0x6f1   :  { %v1425_v8 = vsub.f32 1.0, %v1424_v50 }
 0x6f2   :  { %2286 = vrcp.f32 %v1392_v44  ;;  %v1449_v13 = vand.u32 2147483648, %v1392_v44  ;;  %v1447_v31 = vand.u32 2147483647, %v1392_v44  ;;  %vm1443_vm13 = vweird.f32 %v1392_v44 }
 0x6f3   :  { %v1426_v23 = vmul.f32 %v2279_v22, %v1425_v8  ;;  %v1402_v8 = vand.u32 2147483647, %v2900_v9 }
 0x6f4   :  { %v1450_v35 = vor.u32 1.1754944e-38, %v1449_v13  ;;  %vm1448_vm5 = vcmp.eq.f32.partialorder %v1447_v31, 8.507059e+37  ;;  %v983_v31 = vld [vmem:[#allocation2 + $0x178] sm:$0xff] }
 0x6f5   :  { %v2283_v45 = vpop.eup %2282  ;;  %v1427_v0 = vadd.f32 %v2279_v22, %v1426_v23  ;;  %vm1403_vm9 = vcmp.eq.f32.partialorder %v1402_v8, 8.507059e+37 }
 0x6f6   :  { %v2285_v42 = vpop.eup %2284  ;;  %v1390_v36 = vadd.f32 1.0, %v2283_v45 }
 0x6f7   :  { %v1394_v49 = vmul.f32 %v2285_v42, %v2900_v9  ;;  %v1431_v60 = vsel %vm1430_vm11, %v2279_v22, %v1427_v0  ;;  %vm1399_vm15 = vweird.f32 %v2285_v42 }
 0x6f8   :  { %v2287_v53 = vpop.eup %2286  ;;  %2288 = vrcp.f32 %v1390_v36  ;;  %v1436_v41 = vsel %vm1433_vm14, %v1435_v21, %v1431_v60  ;;  %v1417_v23 = vand.u32 2147483647, %v1390_v36  ;;  %v1419_v45 = vand.u32 2147483648, %v1390_v36  ;;  %vm1400_vm6 = vmor %vm1398_vm4, %vm1399_vm15  ;;  %v975_v60 = vld [vmem:[#allocation2 + $0x140] sm:$0xff]  ;;  %v1524_v21 = vpop.f32.mrf.mxu3 }
 0x6f9   :  { %v1395_v56 = vsub.f32 1.0, %v1394_v49  ;;  %v1439_v20 = vmul.f32 %v2287_v53, %v1392_v44  ;;  %vm1444_vm12 = vweird.f32 %v2287_v53  ;;  %v1455_v44 = vmul.f32 %v1436_v41, %v2866_v59  ;;  %1499 = vmatpush.msrb.mxu2 %v975_v60  ;;  %v980_v41 = vld [vmem:[#allocation2 + $0x160] sm:$0xff] }
 0x6fa   :  { %vm1445_vm3 = vmor %vm1443_vm13, %vm1444_vm12  ;;  %vm1413_vm8 = vweird.f32 %v1390_v36  ;;  %v1420_v9 = vor.u32 1.1754944e-38, %v1419_v45  ;;  %vm1418_vm11 = vcmp.eq.f32.partialorder %v1417_v23, 8.507059e+37 }
 0x6fb   :  { %v1440_v5 = vsub.f32 1.0, %v1439_v20  ;;  %v1396_v40 = vmul.f32 %v2285_v42, %v1395_v56  ;;  %v1405_v20 = vor.u32 1.1754944e-38, %v1404_v30  ;;  %v1459_v59 = vmul.f32 %v1455_v44, %v2750_v29 }
 0x6fd   :  { %v1441_v38 = vmul.f32 %v2287_v53, %v1440_v5  ;;  %v1397_v50 = vadd.f32 %v2285_v42, %v1396_v40 }
 0x6fe   :  { %v2289_v37 = vpop.eup %2288 }
 0x6ff   :  { %v1409_v51 = vmul.f32 %v2289_v37, %v1390_v36  ;;  %v1442_v52 = vadd.f32 %v2287_v53, %v1441_v38  ;;  %vm1414_vm7 = vweird.f32 %v2289_v37  ;;  %v1401_v56 = vsel %vm1400_vm6, %v2285_v42, %v1397_v50 }
 0x700   :  { %vm1415_vm10 = vmor %vm1413_vm8, %vm1414_vm7 }
 0x701   :  { %v1410_v1 = vsub.f32 1.0, %v1409_v51  ;;  %v1446_v22 = vsel %vm1445_vm3, %v2287_v53, %v1442_v52  ;;  %v1406_v53 = vsel %vm1403_vm9, %v1405_v20, %v1401_v56  ;;  %v981_v52 = vld [vmem:[#allocation2 + $0x168] sm:$0xff] }
 0x702   :  { %v1451_v48 = vsel %vm1448_vm5, %v1450_v35, %v1446_v22  ;;  %v1453_v42 = vmul.f32 %v1406_v53, %v2878_v19  ;;  %v2185_v19 = vld [vmem:[%s3059_s10 + $0x6] ss:$0 sm:$0xff]  ;;  %v1586_v53 = vld [vmem:[#allocation2 + $0x1b8] sm:$0xff] }
 0x703   :  { %v1456_v49 = vmul.f32 %v1451_v48, %v2889_v47  ;;  %v1411_v0 = vmul.f32 %v2289_v37, %v1410_v1 }
 0x704   :  { %v1457_v36 = vmul.f32 %v1453_v42, %v2753_v24  ;;  %v1584_v42 = vld [vmem:[#allocation2 + $0x1a8] sm:$0xff] }
 0x705   :  { %v1460_v18 = vmul.f32 %v1456_v49, %v2713_v2  ;;  %v1412_v62 = vadd.f32 %v2289_v37, %v1411_v0 }
 0x707   :  { %1473 = vmatpush.msra.mxu1 %v1460_v18  ;;  %v1416_v5 = vsel %vm1415_vm10, %v2289_v37, %v1412_v62  ;;  %v2186_v62 = vld [vmem:[%s3059_s10 + $0x7] ss:$0 sm:$0xff] }
 0x708   :  { %v1421_v40 = vsel %vm1418_vm11, %v1420_v9, %v1416_v5  ;;  %v1585_v5 = vld [vmem:[#allocation2 + $0x1b0] sm:$0xff] }
 0x709   :  { %1474 = vmatpush.msra.mxu1 %v1459_v59  ;;  %v1454_v47 = vmul.f32 %v1421_v40, %v2894_v25  ;;  %v982_v25 = vld [vmem:[#allocation2 + $0x170] sm:$0xff]  ;;  %v1581_v59 = vld [vmem:[#allocation2 + $0x198] sm:$0xff] }
 0x70a   :  { %1715 = vmatpush.msra.mxu0 %v1581_v59  ;;  %v1743_v59 = vmul.f32 %v2615_v63, %v2649_v55 }
 0x70b   :  { %v1458_v13 = vmul.f32 %v1454_v47, %v2711_v54  ;;  %v1580_v47 = vld [vmem:[#allocation2 + $0x190] sm:$0xff] }
 0x70c   :  { %1716 = vmatpush.msra.mxu0 %v1580_v47  ;;  %v1738_v47 = vmul.f32 %v2611_v61, %v2651_v58 }
 0x70d   :  { %1475 = vmatpush.msra.mxu1 %v1458_v13  ;;  %v1579_v13 = vld [vmem:[#allocation2 + $0x188] sm:$0xff] }
 0x70e   :  { %1717 = vmatpush.msra.mxu0 %v1579_v13  ;;  %v1747_v13 = vadd.f32 %v1743_v59, %v1738_v47 }
 0x70f   :  { %1476 = vmatpush.msra.mxu1 %v1457_v36 }
 0x710   :  { %2113 = vmatmul.msk.f32.vlgmr.msra.gmra.mxu1 %vm339_vm2, %v2758_v7 }
 0x711   :  { %1567 = vmatpush.msrb.mxu1 %v983_v31 }
 0x713   :  { %1568 = vmatpush.msrb.mxu1 %v982_v25  ;;  %v2187_v25 = vld [vmem:[%s3059_s10 + $0x8] ss:$0 sm:$0xff] }
 0x714   :  { %v1753_v55 = vadd.f32 %v2187_v25, %v1747_v13 }
 0x715   :  { %1569 = vmatpush.msrb.mxu1 %v981_v52  ;;  %v1736_v52 = vmul.f32 %v2611_v61, %v2635_v28 }
 0x717   :  { %1570 = vmatpush.msrb.mxu1 %v980_v41 }
 0x719   :  { %1674 = vmatpush.msra.mxu1 %v1586_v53 }
 0x71b   :  { %1675 = vmatpush.msra.mxu1 %v1585_v5 }
 0x71d   :  { %1676 = vmatpush.msra.mxu1 %v1584_v42 }
 0x78d   :  { %v1478_v38 = vpop.f32.mrf.mxu1 }
 0x78e   :  { %2114 = vmatmul.msk.f32.vlgmr.msrb.gmra.mxu2 %vm339_vm2, %v1478_v38 }
 0x811   :  { %v1501_v37 = vpop.f32.mrf.mxu2 }
 0x812   :  { %v1525_v51 = vadd.f32 %v1524_v21, %v1501_v37  ;;  %v1590_v21 = vld [vmem:[#allocation2 + $0x1d0] sm:$0xff] }
 0x814   :  { %v1529_v50 = vadd.f32 %v2185_v19, %v1525_v51  ;;  %v1591_v19 = vld [vmem:[#allocation2 + $0x1d8] sm:$0xff] }
 0x816   :  { %v2116_v35 = vmul.f32 -1.442695, %v1529_v50 }
 0x818   :  { %2290 = vpow2.f32 %v2116_v35  ;;  %v1589_v35 = vld [vmem:[#allocation2 + $0x1c8] sm:$0xff] }
 0x81e   :  { %v2291_v30 = vpop.eup %2290 }
 0x81f   :  { %v1533_v1 = vadd.f32 1.0, %v2291_v30  ;;  %v1741_v30 = vmul.f32 %v2615_v63, %v2630_v17 }
 0x821   :  { %2292 = vrcp.f32 %v1533_v1  ;;  %v1545_v44 = vand.u32 2147483648, %v1533_v1  ;;  %v1543_v45 = vand.u32 2147483647, %v1533_v1  ;;  %vm1539_vm13 = vweird.f32 %v1533_v1 }
 0x823   :  { %v1546_v0 = vor.u32 1.1754944e-38, %v1545_v44  ;;  %vm1544_vm15 = vcmp.eq.f32.partialorder %v1543_v45, 8.507059e+37  ;;  %v1737_v45 = vmul.f32 %v2611_v61, %v2642_v43 }
 0x827   :  { %v2293_v22 = vpop.eup %2292 }
 0x828   :  { %v1535_v8 = vmul.f32 %v2293_v22, %v1533_v1  ;;  %vm1540_vm12 = vweird.f32 %v2293_v22 }
 0x829   :  { %vm1541_vm14 = vmor %vm1539_vm13, %vm1540_vm12 }
 0x82a   :  { %v1536_v48 = vsub.f32 1.0, %v1535_v8 }
 0x82c   :  { %v1537_v23 = vmul.f32 %v2293_v22, %v1536_v48  ;;  %v1745_v48 = vadd.f32 %v1741_v30, %v1736_v52 }
 0x82e   :  { %v1538_v49 = vadd.f32 %v2293_v22, %v1537_v23 }
 0x830   :  { %v1542_v56 = vsel %vm1541_vm14, %v2293_v22, %v1538_v49  ;;  %v1588_v22 = vld [vmem:[#allocation2 + $0x1c0] sm:$0xff] }
 0x831   :  { %v1547_v20 = vsel %vm1544_vm15, %v1546_v0, %v1542_v56  ;;  %v1751_v0 = vadd.f32 %v2187_v25, %v1745_v48 }
 0x832   :  { %v1549_v18 = vmul.f32 %v1547_v20, %v1529_v50  ;;  %v1750_v50 = vadd.f32 %v2187_v25, %v2625_v11  ;;  %v1742_v11 = vmul.f32 %v2615_v63, %v2633_v26 }
 0x834   :  { %2117 = vmatmul.msk.f32.vlgmr.msrb.gmra.mxu1 %vm339_vm2, %v1549_v18  ;;  %v1746_v18 = vadd.f32 %v1742_v11, %v1737_v45 }
 0x8b1   :  { %v1572_v9 = vpop.f32.mrf.mxu1 }
 0x8b2   :  { %v1573_v40 = vadd.f32 %v2186_v62, %v1572_v9 }
 0x8b4   :  { %v1575_v36 = vadd.f32 %v1573_v40, %v2778_v34  ;;  %v1752_v40 = vadd.f32 %v2187_v25, %v1746_v18 }
 0x8b6   :  { %v1576_v60 = vmul.f32 %v1575_v36, %v2775_v32 }
 0x8b8   :  { %1607 = vmatpush.msra.mxu2 %v1576_v60  ;;  %1636 = vmatpush.msrb.mxu3 %v1576_v60  ;;  %v2009_v38 = vmul.f32 %v1576_v60, %v2775_v32 }
 0x8b9   :  { %2118 = vmatmul.msk.f32.vlgmr.msra.gmra.mxu2 %vm100_vm0, %v2493_v3  ;;  %2122 = vmatmul.msk.f32.vlgmr.msrb.gmra.mxu3 %vm100_vm0, %v2495_v4  ;;  %v1583_v3 = vld [vmem:[#allocation2 + $0x1a0] sm:$0xff] }
 0x8ba   :  { %2010 = vst.msk [vmem:[#allocation7] sm:$0xff] %vm339_vm2, %v2009_v38  ;;  %v1578_v4 = vld [vmem:[#allocation2 + $0x180] sm:$0xff]  ;;  %1677 = vmatpush.msra.mxu1 %v1583_v3  ;;  %1864 = vmatpush.msrb.mxu2 %v1591_v19 }
 0x8bb   :  { %1718 = vmatpush.msra.mxu0 %v1578_v4  ;;  %2022 = dma.vmem_to_hbm [thread:$0]  %s2018_s17, 128, %s2020_s3, [#allocation4]  }
 0x8bc   :  { %1865 = vmatpush.msrb.mxu2 %v1590_v21 }
 0x8be   :  { %1866 = vmatpush.msrb.mxu2 %v1589_v35 }
 0x8c0   :  { %1867 = vmatpush.msrb.mxu2 %v1588_v22 }
 0x8c1   :  { %2119 = vmatmul.msk.f32.gmra.mxu2 %vm100_vm0, %v2508_v6  ;;  %2123 = vmatmul.msk.f32.gmra.mxu3 %vm100_vm0, %v2521_v10 }
 0x8c9   :  { %2120 = vmatmul.msk.f32.gmra.mxu2 %vm100_vm0, %v2530_v12  ;;  %2124 = vmatmul.msk.f32.gmra.mxu3 %vm100_vm0, %v2539_v14 }
 0x8d1   :  { %2121 = vmatmul.msk.f32.gmra.mxu2 %vm100_vm0, %v2545_v15  ;;  %2125 = vmatmul.msk.f32.gmra.mxu3 %vm100_vm0, %v2551_v16 }
 0x93c   :  { %v1609_v6 = vpop.f32.mrf.mxu2  ;;  %v1638_v34 = vpop.f32.mrf.mxu3 }
 0x93d   :  { %2126 = vmatmul.msk.f32.vlgmr.msra.gmra.mxu1 %vm339_vm2, %v1638_v34  ;;  %2130 = vmatmul.msk.f32.vlgmr.msra.gmra.mxu0 %vm339_vm2, %v1609_v6 }
 0x944   :  { %v1612_v10 = vpop.f32.mrf.mxu2  ;;  %v1641_v12 = vpop.f32.mrf.mxu3 }
 0x945   :  { %2127 = vmatmul.msk.f32.gmra.mxu1 %vm339_vm2, %v1641_v12  ;;  %2131 = vmatmul.msk.f32.gmra.mxu0 %vm339_vm2, %v1612_v10 }
 0x94c   :  { %v1615_v14 = vpop.f32.mrf.mxu2  ;;  %v1644_v15 = vpop.f32.mrf.mxu3 }
 0x94d   :  { %2128 = vmatmul.msk.f32.gmra.mxu1 %vm339_vm2, %v1644_v15  ;;  %2132 = vmatmul.msk.f32.gmra.mxu0 %vm339_vm2, %v1615_v14 }
 0x954   :  { %v1618_v16 = vpop.f32.mrf.mxu2  ;;  %v1647_v31 = vpop.f32.mrf.mxu3 }
 0x955   :  { %2129 = vmatmul.msk.f32.gmra.mxu1 %vm339_vm2, %v1647_v31  ;;  %2133 = vmatmul.msk.f32.gmra.mxu0 %vm339_vm2, %v1618_v16 }
 0x9ba   :  { %v1679_v37 = vpop.f32.mrf.mxu1  ;;  %v1720_v51 = vpop.f32.mrf.mxu0 }
 0x9bb   :  { %v1721_v41 = vadd.f32 %v1720_v51, %v1679_v37 }
 0x9bd   :  { %v1754_v1 = vadd.f32 %v1750_v50, %v1721_v41 }
 0x9bf   :  { %v2135_v8 = vmul.f32 -1.442695, %v1754_v1 }
 0x9c1   :  { %2294 = vpow2.f32 %v2135_v8 }
 0x9c2   :  { %v1682_v44 = vpop.f32.mrf.mxu1  ;;  %v1723_v23 = vpop.f32.mrf.mxu0 }
 0x9c3   :  { %v1724_v49 = vadd.f32 %v1723_v23, %v1682_v44 }
 0x9c5   :  { %v2966_v56 = vadd.f32 %v1751_v0, %v1724_v49 }
 0x9c7   :  { %v2295_v20 = vpop.eup %2294  ;;  %v2136_v17 = vmul.f32 -1.442695, %v2966_v56 }
 0x9c8   :  { %v1770_v62 = vadd.f32 1.0, %v2295_v20 }
 0x9c9   :  { %2296 = vpow2.f32 %v2136_v17 }
 0x9ca   :  { %2298 = vrcp.f32 %v1770_v62  ;;  %v1685_v9 = vpop.f32.mrf.mxu1  ;;  %v1726_v53 = vpop.f32.mrf.mxu0  ;;  %v1785_v10 = vand.u32 2147483648, %v1770_v62  ;;  %v1783_v61 = vand.u32 2147483647, %v1770_v62  ;;  %vm1779_vm3 = vweird.f32 %v1770_v62 }
 0x9cb   :  { %v1727_v5 = vadd.f32 %v1726_v53, %v1685_v9 }
 0x9cc   :  { %v1786_v21 = vor.u32 1.1754944e-38, %v1785_v10  ;;  %vm1784_vm5 = vcmp.eq.f32.partialorder %v1783_v61, 8.507059e+37 }
 0x9cd   :  { %v2973_v26 = vadd.f32 %v1752_v40, %v1727_v5 }
 0x9cf   :  { %v2297_v42 = vpop.eup %2296  ;;  %v2137_v36 = vmul.f32 -1.442695, %v2973_v26 }
 0x9d0   :  { %v2299_v60 = vpop.eup %2298  ;;  %v1771_v38 = vadd.f32 1.0, %v2297_v42 }
 0x9d1   :  { %v1775_v3 = vmul.f32 %v2299_v60, %v1770_v62  ;;  %2300 = vpow2.f32 %v2137_v36  ;;  %vm1780_vm0 = vweird.f32 %v2299_v60 }
 0x9d2   :  { %2302 = vrcp.f32 %v1771_v38  ;;  %v1688_v4 = vpop.f32.mrf.mxu1  ;;  %v1729_v6 = vpop.f32.mrf.mxu0  ;;  %vm1781_vm4 = vmor %vm1779_vm3, %vm1780_vm0  ;;  %v1800_v35 = vand.u32 2147483648, %v1771_v38  ;;  %v1798_v22 = vand.u32 2147483647, %v1771_v38  ;;  %vm1794_vm7 = vweird.f32 %v1771_v38 }
 0x9d3   :  { %v1776_v34 = vsub.f32 1.0, %v1775_v3  ;;  %v1730_v63 = vadd.f32 %v1729_v6, %v1688_v4 }
 0x9d4   :  { %v1801_v45 = vor.u32 1.1754944e-38, %v1800_v35  ;;  %vm1799_vm9 = vcmp.eq.f32.partialorder %v1798_v22, 8.507059e+37 }
 0x9d5   :  { %v1777_v12 = vmul.f32 %v2299_v60, %v1776_v34  ;;  %v2976_v14 = vadd.f32 %v1753_v55, %v1730_v63 }
 0x9d7   :  { %v2301_v15 = vpop.eup %2300  ;;  %v1778_v16 = vadd.f32 %v2299_v60, %v1777_v12  ;;  %v2138_v31 = vmul.f32 -1.442695, %v2976_v14 }
 0x9d8   :  { %v2303_v19 = vpop.eup %2302  ;;  %v1772_v37 = vadd.f32 1.0, %v2301_v15 }
 0x9d9   :  { %v1782_v51 = vsel %vm1781_vm4, %v2299_v60, %v1778_v16  ;;  %2304 = vpow2.f32 %v2138_v31  ;;  %v1790_v52 = vmul.f32 %v2303_v19, %v1771_v38  ;;  %vm1795_vm6 = vweird.f32 %v2303_v19 }
 0x9da   :  { %v1787_v25 = vsel %vm1784_vm5, %v1786_v21, %v1782_v51  ;;  %2306 = vrcp.f32 %v1772_v37  ;;  %vm1796_vm8 = vmor %vm1794_vm7, %vm1795_vm6  ;;  %v1815_v17 = vand.u32 2147483648, %v1772_v37  ;;  %v1813_v62 = vand.u32 2147483647, %v1772_v37 }
 0x9db   :  { %v1834_v41 = vmul.f32 %v1787_v25, %v1754_v1  ;;  %v1791_v50 = vsub.f32 1.0, %v1790_v52  ;;  %vm1809_vm11 = vweird.f32 %v1772_v37 }
 0x9dc   :  { %v1816_v59 = vor.u32 1.1754944e-38, %v1815_v17  ;;  %vm1814_vm13 = vcmp.eq.f32.partialorder %v1813_v62, 8.507059e+37 }
 0x9dd   :  { %2139 = vmatmul.msk.f32.vlgmr.msrb.gmra.mxu2 %vm339_vm2, %v1834_v41  ;;  %v1792_v30 = vmul.f32 %v2303_v19, %v1791_v50 }
 0x9df   :  { %v2305_v8 = vpop.eup %2304  ;;  %v1793_v48 = vadd.f32 %v2303_v19, %v1792_v30 }
 0x9e0   :  { %v2307_v44 = vpop.eup %2306  ;;  %v1773_v23 = vadd.f32 1.0, %v2305_v8 }
 0x9e1   :  { %v1797_v49 = vsel %vm1796_vm8, %v2303_v19, %v1793_v48  ;;  %v1805_v0 = vmul.f32 %v2307_v44, %v1772_v37  ;;  %vm1810_vm10 = vweird.f32 %v2307_v44 }
 0x9e2   :  { %2308 = vrcp.f32 %v1773_v23  ;;  %v1802_v11 = vsel %vm1799_vm9, %v1801_v45, %v1797_v49  ;;  %vm1811_vm12 = vmor %vm1809_vm11, %vm1810_vm10  ;;  %v1828_v60 = vand.u32 2147483647, %v1773_v23  ;;  %vm1824_vm15 = vweird.f32 %v1773_v23 }
 0x9e3   :  { %v1835_v1 = vmul.f32 %v1802_v11, %v2966_v56  ;;  %v1806_v20 = vsub.f32 1.0, %v1805_v0  ;;  %v1830_v56 = vand.u32 2147483648, %v1773_v23 }
 0x9e4   :  { %vm1829_vm3 = vcmp.eq.f32.partialorder %v1828_v60, 8.507059e+37 }
 0x9e5   :  { %2140 = vmatmul.msk.f32.gmra.mxu2 %vm339_vm2, %v1835_v1  ;;  %v1807_v18 = vmul.f32 %v2307_v44, %v1806_v20  ;;  %v1831_v3 = vor.u32 1.1754944e-38, %v1830_v56 }
 0x9e7   :  { %v1808_v9 = vadd.f32 %v2307_v44, %v1807_v18 }
 0x9e8   :  { %v2309_v53 = vpop.eup %2308 }
 0x9e9   :  { %v1812_v5 = vsel %vm1811_vm12, %v2307_v44, %v1808_v9  ;;  %v1820_v40 = vmul.f32 %v2309_v53, %v1773_v23  ;;  %vm1825_vm14 = vweird.f32 %v2309_v53 }
 0x9ea   :  { %v1817_v47 = vsel %vm1814_vm13, %v1816_v59, %v1812_v5  ;;  %vm1826_vm0 = vmor %vm1824_vm15, %vm1825_vm14  ;;  %v2189_v5 = vld [vmem:[%s3058_s9 + $0x2] ss:$0 sm:$0xff] }
 0x9eb   :  { %v1836_v42 = vmul.f32 %v1817_v47, %v2973_v26  ;;  %v1821_v13 = vsub.f32 1.0, %v1820_v40  ;;  %v2188_v26 = vld [vmem:[%s3059_s10 + $0x9] ss:$0 sm:$0xff] }
 0x9ed   :  { %2141 = vmatmul.msk.f32.gmra.mxu2 %vm339_vm2, %v1836_v42  ;;  %v1822_v36 = vmul.f32 %v2309_v53, %v1821_v13 }
 0x9ef   :  { %v1823_v38 = vadd.f32 %v2309_v53, %v1822_v36 }
 0x9f1   :  { %v1827_v4 = vsel %vm1826_vm0, %v2309_v53, %v1823_v38 }
 0x9f2   :  { %v1832_v6 = vsel %vm1829_vm3, %v1831_v3, %v1827_v4 }
 0x9f3   :  { %v1837_v34 = vmul.f32 %v1832_v6, %v2976_v14 }
 0x9f5   :  { %2142 = vmatmul.msk.f32.gmra.mxu2 %vm339_vm2, %v1837_v34 }
 0xa60   :  { %v1869_v63 = vpop.f32.mrf.mxu2 }
 0xa61   :  { %v2989_v55 = vadd.f32 %v2188_v26, %v1869_v63 }
 0xa63   :  { %v2143_v61 = vmul.f32 -1.442695, %v2989_v55 }
 0xa68   :  { %v1872_v10 = vpop.f32.mrf.mxu2 }
 0xa69   :  { %v1873_v12 = vadd.f32 %v2188_v26, %v1872_v10 }
 0xa6b   :  { %v2144_v15 = vmul.f32 -1.442695, %v1873_v12 }
 0xa6d   :  { %2310 = vpow2.f32 %v2144_v15 }
 0xa6e   :  { %2312 = vpow2.f32 %v2143_v61 }
 0xa70   :  { %v1875_v16 = vpop.f32.mrf.mxu2 }
 0xa71   :  { %v1876_v31 = vadd.f32 %v2188_v26, %v1875_v16 }
 0xa73   :  { %v2311_v19 = vpop.eup %2310  ;;  %v2145_v14 = vmul.f32 -1.442695, %v1876_v31 }
 0xa74   :  { %v2313_v21 = vpop.eup %2312  ;;  %v1894_v37 = vadd.f32 1.0, %v2311_v19 }
 0xa75   :  { %2314 = vpow2.f32 %v2145_v14  ;;  %v2992_v51 = vadd.f32 1.0, %v2313_v21 }
 0xa76   :  { %2316 = vrcp.f32 %v1894_v37  ;;  %v1923_v48 = vand.u32 2147483648, %v1894_v37  ;;  %v1921_v45 = vand.u32 2147483647, %v1894_v37  ;;  %vm1917_vm5 = vweird.f32 %v1894_v37 }
 0xa77   :  { %2318 = vrcp.f32 %v2992_v51  ;;  %vm1902_vm14 = vweird.f32 %v2992_v51  ;;  %v1908_v14 = vand.u32 2147483648, %v2992_v51 }
 0xa78   :  { %v1878_v52 = vpop.f32.mrf.mxu2  ;;  %v1924_v20 = vor.u32 1.1754944e-38, %v1923_v48  ;;  %vm1922_vm7 = vcmp.eq.f32.partialorder %v1921_v45, 8.507059e+37 }
 0xa79   :  { %v2994_v25 = vadd.f32 %v2188_v26, %v1878_v52 }
 0xa7b   :  { %v2315_v41 = vpop.eup %2314  ;;  %v2146_v50 = vmul.f32 -1.442695, %v2994_v25 }
 0xa7c   :  { %v2317_v35 = vpop.eup %2316  ;;  %v1895_v30 = vadd.f32 1.0, %v2315_v41 }
 0xa7d   :  { %v1913_v22 = vmul.f32 %v2317_v35, %v1894_v37  ;;  %2320 = vpow2.f32 %v2146_v50  ;;  %v2998_v44 = vpop.eup %2318  ;;  %vm1918_vm4 = vweird.f32 %v2317_v35 }
 0xa7e   :  { %2322 = vrcp.f32 %v1895_v30  ;;  %v1898_v1 = vmul.f32 %v2998_v44, %v2992_v51  ;;  %vm1919_vm6 = vmor %vm1917_vm5, %vm1918_vm4  ;;  %v1938_v47 = vand.u32 2147483648, %v1895_v30  ;;  %v1936_v13 = vand.u32 2147483647, %v1895_v30 }
 0xa7f   :  { %v1914_v8 = vsub.f32 1.0, %v1913_v22  ;;  %vm1932_vm9 = vweird.f32 %v1895_v30  ;;  %vm1903_vm12 = vweird.f32 %v2998_v44 }
 0xa80   :  { %v1899_v40 = vsub.f32 1.0, %v1898_v1  ;;  %v1939_v4 = vor.u32 1.1754944e-38, %v1938_v47  ;;  %vm1937_vm11 = vcmp.eq.f32.partialorder %v1936_v13, 8.507059e+37  ;;  %vm3011_vm15 = vmor %vm1902_vm14, %vm1903_vm12  ;;  %v205_v1 = vadd.f32 1e-08, %v2635_v28 }
 0xa81   :  { %v1915_v23 = vmul.f32 %v2317_v35, %v1914_v8 }
 0xa82   :  { %v1900_v3 = vmul.f32 %v2998_v44, %v1899_v40 }
 0xa83   :  { %v2321_v49 = vpop.eup %2320  ;;  %v1916_v0 = vadd.f32 %v2317_v35, %v1915_v23 }
 0xa84   :  { %v2323_v11 = vpop.eup %2322  ;;  %v1896_v17 = vadd.f32 1.0, %v2321_v49 }
 0xa85   :  { %v1920_v18 = vsel %vm1919_vm6, %v2317_v35, %v1916_v0  ;;  %v1928_v62 = vmul.f32 %v2323_v11, %v1895_v30  ;;  %vm1933_vm8 = vweird.f32 %v2323_v11  ;;  %v1909_v30 = vor.u32 1.1754944e-38, %v1908_v14 }
 0xa86   :  { %v1925_v9 = vsel %vm1922_vm7, %v1924_v20, %v1920_v18  ;;  %2324 = vrcp.f32 %v1896_v17  ;;  %vm1934_vm10 = vmor %vm1932_vm9, %vm1933_vm8  ;;  %v1953_v61 = vand.u32 2147483648, %v1896_v17  ;;  %v1951_v16 = vand.u32 2147483647, %v1896_v17 }
 0xa87   :  { %v1958_v53 = vmul.f32 %v1925_v9, %v1873_v12  ;;  %v1929_v59 = vsub.f32 1.0, %v1928_v62  ;;  %v1901_v12 = vadd.f32 %v2998_v44, %v1900_v3  ;;  %vm1947_vm0 = vweird.f32 %v1896_v17 }
 0xa88   :  { %v1954_v41 = vor.u32 1.1754944e-38, %v1953_v61  ;;  %vm1952_vm4 = vcmp.eq.f32.partialorder %v1951_v16, 8.507059e+37 }
 0xa89   :  { %v1930_v42 = vmul.f32 %v2323_v11, %v1929_v59  ;;  %v1964_v56 = vmul.f32 %v2189_v5, %v1958_v53  ;;  %v1905_v50 = vsel %vm3011_vm15, %v2998_v44, %v1901_v12  ;;  %v206_v44 = vadd.f32 1e-08, %v2642_v43 }
 0xa8b   :  { %v1931_v36 = vadd.f32 %v2323_v11, %v1930_v42  ;;  %v1970_v60 = vsel %vm339_vm2, %v1964_v56, 0.0  ;;  %2326 = vrsqrt.f32 %v206_v44  ;;  %vm234_vm8 = vweird.f32 %v206_v44 }
 0xa8c   :  { %v2325_v38 = vpop.eup %2324  ;;  %1971 = vadd.xlane.f32.xlu2 %v1970_v60 }
 0xa8d   :  { %v1935_v6 = vsel %vm1934_vm10, %v2323_v11, %v1931_v36  ;;  %v1943_v34 = vmul.f32 %v2325_v38, %v1896_v17  ;;  %vm1948_vm13 = vweird.f32 %v2325_v38  ;;  %v207_v11 = vadd.f32 1e-08, %v2651_v58 }
 0xa8e   :  { %v1940_v63 = vsel %vm1937_vm11, %v1939_v4, %v1935_v6  ;;  %vm1949_vm3 = vmor %vm1947_vm0, %vm1948_vm13  ;;  %vm224_vm13 = vweird.f32 %v205_v1 }
 0xa8f   :  { %v1959_v26 = vmul.f32 %v1940_v63, %v1876_v31  ;;  %v1944_v10 = vsub.f32 1.0, %v1943_v34  ;;  %v1906_v31 = vand.u32 2147483647, %v2992_v51  ;;  %2328 = vrsqrt.f32 %v207_v11 }
 0xa90   :  { %2330 = vrsqrt.f32 %v205_v1  ;;  %vm244_vm11 = vweird.f32 %v207_v11 }
 0xa91   :  { %v1945_v15 = vmul.f32 %v2325_v38, %v1944_v10  ;;  %v1965_v19 = vmul.f32 %v2189_v5, %v1959_v26  ;;  %vm1907_vm5 = vcmp.eq.f32.partialorder %v1906_v31, 8.507059e+37  ;;  %v2327_v20 = vpop.eup %2326 }
 0xa92   :  { %v1910_v48 = vsel %vm1907_vm5, %v1909_v30, %v1905_v50  ;;  %v229_v18 = vmul.f32 %v2327_v20, %v206_v44  ;;  %vm235_vm6 = vweird.f32 %v2327_v20 }
 0xa93   :  { %v1946_v37 = vadd.f32 %v2325_v38, %v1945_v15  ;;  %v1973_v52 = vsel %vm339_vm2, %v1965_v19, 0.0  ;;  %v1957_v23 = vmul.f32 %v1910_v48, %v2989_v55  ;;  %vm236_vm10 = vmor %vm234_vm8, %vm235_vm6 }
 0xa94   :  { %1974 = vadd.xlane.f32.xlu0 %v1973_v52  ;;  %v230_v53 = vmul.f32 %v2327_v20, %v229_v18 }
 0xa95   :  { %v1950_v35 = vsel %vm1949_vm3, %v2325_v38, %v1946_v37  ;;  %v1963_v49 = vmul.f32 %v2189_v5, %v1957_v23  ;;  %v2329_v55 = vpop.eup %2328 }
 0xa96   :  { %v1955_v22 = vsel %vm1952_vm4, %v1954_v41, %v1950_v35  ;;  %v2331_v17 = vpop.eup %2330  ;;  %v239_v62 = vmul.f32 %v2329_v55, %v207_v11  ;;  %v231_v58 = vmul.f32 0.5, %v230_v53  ;;  %vm245_vm7 = vweird.f32 %v2329_v55 }
 0xa97   :  { %v1960_v8 = vmul.f32 %v1955_v22, %v2994_v25  ;;  %v1967_v0 = vsel %vm339_vm2, %v1963_v49, 0.0  ;;  %v204_v25 = vadd.f32 1e-08, %v2601_v57  ;;  %v219_v9 = vmul.f32 %v2331_v17, %v205_v1  ;;  %vm246_vm12 = vmor %vm244_vm11, %vm245_vm7 }
 0xa98   :  { %v240_v59 = vmul.f32 %v2329_v55, %v239_v62  ;;  %v232_v42 = vsub.f32 1.5, %v231_v58  ;;  %vm225_vm9 = vweird.f32 %v2331_v17 }
 0xa99   :  { %v1966_v51 = vmul.f32 %v2189_v5, %v1960_v8  ;;  %2332 = vrsqrt.f32 %v204_v25  ;;  %v220_v43 = vmul.f32 %v2331_v17, %v219_v9  ;;  %vm226_vm14 = vmor %vm224_vm13, %vm225_vm9  ;;  %vm214_vm0 = vweird.f32 %v204_v25 }
 0xa9a   :  { %v241_v47 = vmul.f32 0.5, %v240_v59  ;;  %v233_v57 = vmul.f32 %v2327_v20, %v232_v42 }
 0xa9b   :  { %v1976_v45 = vsel %vm339_vm2, %v1966_v51, 0.0  ;;  %v221_v28 = vmul.f32 0.5, %v220_v43 }
 0xa9c   :  { %1977 = vadd.xlane.f32.xlu1 %v1976_v45  ;;  %v242_v13 = vsub.f32 1.5, %v241_v47  ;;  %v237_v4 = vsel %vm236_vm10, %v2327_v20, %v233_v57 }
 0xa9d   :  { %v222_v36 = vsub.f32 1.5, %v221_v28  ;;  %v250_v10 = vmul.f32 %v237_v4, %v2573_v39 }
 0xa9e   :  { %v243_v60 = vmul.f32 %v2329_v55, %v242_v13 }
 0xa9f   :  { %v2333_v5 = vpop.eup %2332  ;;  %v223_v3 = vmul.f32 %v2331_v17, %v222_v36 }
 0xaa0   :  { %v209_v40 = vmul.f32 %v2333_v5, %v204_v25  ;;  %v247_v6 = vsel %vm246_vm12, %v2329_v55, %v243_v60  ;;  %vm215_vm15 = vweird.f32 %v2333_v5 }
 0xaa1   :  { %v227_v63 = vsel %vm226_vm14, %v2331_v17, %v223_v3  ;;  %v251_v12 = vmul.f32 %v247_v6, %v2582_v46  ;;  %vm216_vm3 = vmor %vm214_vm0, %vm215_vm15 }
 0xaa2   :  { %v210_v56 = vmul.f32 %v2333_v5, %v209_v40  ;;  %v249_v19 = vmul.f32 %v227_v63, %v2567_v33 }
 0xaa4   :  { %1968 = vadd.xlane.f32.xlu1 %v1967_v0  ;;  %v211_v38 = vmul.f32 0.5, %v210_v56 }
 0xaa6   :  { %v212_v34 = vsub.f32 1.5, %v211_v38 }
 0xaa8   :  { %v213_v16 = vmul.f32 %v2333_v5, %v212_v34 }
 0xaaa   :  { %v217_v52 = vsel %vm216_vm3, %v2333_v5, %v213_v16 }
 0xaab   :  { %v248_v46 = vmul.f32 %v217_v52, %v2561_v27  ;;  %v2335_v27 = vld [vmem:[%s3050_s1] sm:$0xff] }
 0xaff   :  { %v1972_v61 = vpop.xlane.xlu2 %1971 }
 0xb00   :  { %v1980_v31 = vmul.f32 %v1972_v61, %v249_v19 }
 0xb02   :  { %v1984_v39 = vmul.f32 %v1980_v31, %v2711_v54 }
 0xb07   :  { %v1975_v26 = vpop.xlane.xlu0 %1974 }
 0xb08   :  { %v1981_v14 = vmul.f32 %v1975_v26, %v250_v10 }
 0xb0a   :  { %v1985_v41 = vmul.f32 %v1981_v14, %v2750_v29 }
 0xb0f   :  { %v1978_v15 = vpop.xlane.xlu1 %1977 }
 0xb10   :  { %v1982_v21 = vmul.f32 %v1978_v15, %v251_v12 }
 0xb12   :  { %v1986_v37 = vmul.f32 %v1982_v21, %v2713_v2 }
 0xb14   :  { %1999 = vmatpush.msra.mxu3 %v1986_v37 }
 0xb16   :  { %2000 = vmatpush.msra.mxu3 %v1985_v41 }
 0xb17   :  { %v1969_v50 = vpop.xlane.xlu1 %1968 }
 0xb18   :  { %v1979_v35 = vmul.f32 %v1969_v50, %v248_v46  ;;  %2001 = vmatpush.msra.mxu3 %v1984_v39 }
 0xb1a   :  { %v1983_v33 = vmul.f32 %v1979_v35, %v2753_v24 }
 0xb1c   :  { %2002 = vmatpush.msra.mxu3 %v1983_v33 }
 0xb1d   :  { %2147 = vmatmul.msk.f32.vlgmr.msra.gmra.mxu3 %vm339_vm2, %v2758_v7 }
 0xba0   :  { %v2004_v54 = vpop.f32.mrf.mxu3 }
 0xba1   :  { %v2007_v2 = vadd.f32 %v2335_v27, %v2004_v54 }
 0xba3   :  { %v2008_v29 = vmul.f32 %v2007_v2, %v2775_v32 }
 0xba5   :  { %2011 = vst.msk [vmem:[%s3062_s13] sm:$0xff] %vm191_vm1, %v2008_v29 }
 0xba6   :  { %2400 = dma.done.wait [#allocation4], 128  }
 0xba7   :  { %2401 = vsyncadd [#allocation4], 4294967168 }
 0xba8   :  { %2031 = vsyncpa [#allocation3], 1 }
 0xba9   :  { %2032 = vsyncpa [#allocation4], 1 }
 0xbaa   :  { %2033 = vsyncpa [#allocation5], 1 }

</bundles_post_ra>
